<compile_context>
chip_gen: v6e
topology: v6e:2x2x1
jax: 0.10.0
libtpu: 0.0.40
codegen_flags: <defaults>
</compile_context>

<pallas_src>
import math

import jax
import jax.numpy as jnp
from jax.experimental import pallas as pl
from jax.experimental.pallas import tpu as pltpu


def _round_up(x, m):
    return ((x + m - 1) // m) * m


# ----------------------------------------------------------------------------
# Kernels
# ----------------------------------------------------------------------------
def _matmul_bn_kernel(x_ref, w_ref, scale_ref, shift_ref, o_ref, acc_ref):
    """out = (X @ W) * scale + shift, accumulated over the K grid axis."""
    @pl.when(pl.program_id(1) == 0)
    def _():
        acc_ref[...] = jnp.zeros_like(acc_ref)

    acc_ref[...] += jnp.dot(x_ref[...], w_ref[...],
                            preferred_element_type=jnp.float32)

    @pl.when(pl.program_id(1) == pl.num_programs(1) - 1)
    def _():
        o_ref[...] = (acc_ref[...] * scale_ref[...]
                      + shift_ref[...]).astype(o_ref.dtype)


def _conv1x1_bn_att_fuse_kernel(x_ref, y_ref, w1_ref, s1_ref, b1_ref,
                                wax_ref, way_ref, ba_ref, o_ref):
    """Fused conv1(1x1)+BN + attention fusion.

    x_mid  = BN(x @ W1)                         (tm, Cmid)
    z      = sigmoid([x_mid, y] @ Wa + ba)      (tm, 2)
    out    = x_mid * z[:, 0] + y * z[:, 1]
    """
    xm = jnp.dot(x_ref[...], w1_ref[...], preferred_element_type=jnp.float32)
    xm = xm * s1_ref[...] + b1_ref[...]                       # f32 (tm, Cmid)
    y = y_ref[...].astype(jnp.float32)
    logits = (jnp.dot(xm, wax_ref[...], preferred_element_type=jnp.float32)
              + jnp.dot(y, way_ref[...], preferred_element_type=jnp.float32)
              + ba_ref[...])                                  # (tm, 2)
    z = jax.nn.sigmoid(logits)
    o_ref[...] = (xm * z[:, 0:1] + y * z[:, 1:2]).astype(o_ref.dtype)


# ----------------------------------------------------------------------------
# pallas_call wrappers
# ----------------------------------------------------------------------------
def matmul_bn(x2d, w, scale, shift, *, tile_m=512, tile_k=512):
    """(M, K) @ (K, Cout) with folded-BN epilogue; M padded, K tiled if large."""
    m, k = x2d.shape
    cout = w.shape[1]

    tile_m = min(tile_m, _round_up(m, 8))
    m_pad = _round_up(m, tile_m)
    if m_pad != m:
        x2d = jnp.pad(x2d, ((0, m_pad - m), (0, 0)))

    if k <= tile_k:
        tk, k_pad = k, k
    else:
        tk = tile_k                       # multiple of 128
        k_pad = _round_up(k, tk)
        if k_pad != k:
            x2d = jnp.pad(x2d, ((0, 0), (0, k_pad - k)))
            w = jnp.pad(w, ((0, k_pad - k), (0, 0)))

    out = pl.pallas_call(
        _matmul_bn_kernel,
        out_shape=jax.ShapeDtypeStruct((m_pad, cout), x2d.dtype),
        grid_spec=pltpu.PrefetchScalarGridSpec(
            num_scalar_prefetch=0,
            grid=(m_pad // tile_m, k_pad // tk),
            in_specs=[
                pl.BlockSpec((tile_m, tk), lambda i, kk: (i, kk)),
                pl.BlockSpec((tk, cout), lambda i, kk: (kk, 0)),
                pl.BlockSpec((1, cout), lambda i, kk: (0, 0)),
                pl.BlockSpec((1, cout), lambda i, kk: (0, 0)),
            ],
            out_specs=pl.BlockSpec((tile_m, cout), lambda i, kk: (i, 0)),
            scratch_shapes=[pltpu.VMEM((tile_m, cout), jnp.float32)],
        ),
        compiler_params=pltpu.CompilerParams(
            dimension_semantics=("parallel", "arbitrary")),
    )(x2d, w, scale, shift)
    return out[:m]


def conv1x1_bn_att_fuse(x2d, y2d, w1, s1, b1, wa_x, wa_y, ba, *, tile_m=512):
    """Fused conv1(1x1)+BN + attention fusion over flattened spatial rows."""
    m, cin = x2d.shape
    cmid = w1.shape[1]

    tile_m = min(tile_m, _round_up(m, 8))
    m_pad = _round_up(m, tile_m)
    if m_pad != m:
        x2d = jnp.pad(x2d, ((0, m_pad - m), (0, 0)))
        y2d = jnp.pad(y2d, ((0, m_pad - m), (0, 0)))

    out = pl.pallas_call(
        _conv1x1_bn_att_fuse_kernel,
        out_shape=jax.ShapeDtypeStruct((m_pad, cmid), x2d.dtype),
        grid_spec=pltpu.PrefetchScalarGridSpec(
            num_scalar_prefetch=0,
            grid=(m_pad // tile_m,),
            in_specs=[
                pl.BlockSpec((tile_m, cin), lambda i: (i, 0)),
                pl.BlockSpec((tile_m, cmid), lambda i: (i, 0)),
                pl.BlockSpec((cin, cmid), lambda i: (0, 0)),
                pl.BlockSpec((1, cmid), lambda i: (0, 0)),
                pl.BlockSpec((1, cmid), lambda i: (0, 0)),
                pl.BlockSpec((cmid, 2), lambda i: (0, 0)),
                pl.BlockSpec((cmid, 2), lambda i: (0, 0)),
                pl.BlockSpec((1, 2), lambda i: (0, 0)),
            ],
            out_specs=pl.BlockSpec((tile_m, cmid), lambda i: (i, 0)),
        ),
        compiler_params=pltpu.CompilerParams(
            dimension_semantics=("parallel",)),
    )(x2d, y2d, w1, s1, b1, wa_x, wa_y, ba)
    return out[:m]


# ----------------------------------------------------------------------------
# Glue helpers (plain JAX)
# ----------------------------------------------------------------------------
def _bn_fold(gamma, beta, mean, var, eps=1e-5):
    scale = gamma / jnp.sqrt(var + eps)
    shift = beta - mean * scale
    return scale.reshape(1, -1), shift.reshape(1, -1)


def _nearest_resize_nhwc(x, oh, ow):
    # Matches F.interpolate(mode='nearest'): src = floor(dst * in / out)
    n, h, w, c = x.shape
    ri = (jnp.arange(oh) * h) // oh
    ci = (jnp.arange(ow) * w) // ow
    return x[:, ri][:, :, ci]


def _im2col_3x3(x_nhwc):
    """(N,H,W,C) -> (N*H*W, 9*C), tap order (dy, dx, cin), SAME padding."""
    n, h, w, c = x_nhwc.shape
    xp = jnp.pad(x_nhwc, ((0, 0), (1, 1), (1, 1), (0, 0)))
    cols = [xp[:, dy:dy + h, dx:dx + w, :]
            for dy in range(3) for dx in range(3)]
    return jnp.concatenate(cols, axis=-1).reshape(n * h * w, 9 * c)


# ----------------------------------------------------------------------------
# ABF forward
# ----------------------------------------------------------------------------
def abf_forward(x_nchw, params, y_nchw=None, shape=None, out_shape=None):
    """Returns (y, x) in NCHW, matching the PyTorch module."""
    n, c_in, h, w = x_nchw.shape
    mid = params["w1"].shape[0]
    c_out = params["w2"].shape[0]

    x_nhwc = jnp.transpose(x_nchw, (0, 2, 3, 1))
    x2d = x_nhwc.reshape(n * h * w, c_in)
    w1 = params["w1"][:, :, 0, 0].T                       # (Cin, Cmid)
    s1, b1 = _bn_fold(*params["bn1"])

    if y_nchw is not None:
        # ---- fused conv1(1x1)+BN + attention fusion ------------------------
        y_nhwc = jnp.transpose(y_nchw, (0, 2, 3, 1))
        y_up = _nearest_resize_nhwc(y_nhwc, shape, shape)  # (n, h, w, Cmid)
        y2d = y_up.reshape(n * h * w, mid)
        wa = params["wa"][:, :, 0, 0].T                    # (2*Cmid, 2)
        wa_x, wa_y = wa[:mid], wa[mid:]
        ba = params["ba"].reshape(1, 2)
        x_mid2d = conv1x1_bn_att_fuse(x2d, y2d, w1, s1, b1, wa_x, wa_y, ba)
    else:
        # ---- conv1(1x1)+BN only --------------------------------------------
        x_mid2d = matmul_bn(x2d, w1, s1, b1)

    x_mid = x_mid2d.reshape(n, h, w, mid)

    # ---- optional nearest resize to out_shape ------------------------------
    if out_shape is not None and x_mid.shape[2] != out_shape:
        x_mid = _nearest_resize_nhwc(x_mid, out_shape, out_shape)

    # ---- conv2 (3x3, pad 1, no bias) + BN as im2col matmul ------------------
    oh, ow = x_mid.shape[1], x_mid.shape[2]
    patches = _im2col_3x3(x_mid)                           # (n*oh*ow, 9*Cmid)
    w2 = jnp.transpose(params["w2"], (2, 3, 1, 0)).reshape(9 * mid, c_out)
    s2, b2 = _bn_fold(*params["bn2"])
    y2d_out = matmul_bn(patches, w2, s2, b2)               # (n*oh*ow, Cout)
    y_out = y2d_out.reshape(n, oh, ow, c_out)

    y_nchw_out = jnp.transpose(y_out, (0, 3, 1, 2))
    x_nchw_out = jnp.transpose(x_mid, (0, 3, 1, 2))
    return y_nchw_out, x_nchw_out


# ----------------------------------------------------------------------------
# Deterministic parameter init (mirrors the PyTorch __init__)
# ----------------------------------------------------------------------------
def make_params(in_channel, mid_channel, out_channel, fuse, key):
    k1, k2, k3, k4 = jax.random.split(key, 4)
    # kaiming_uniform_(a=1): bound = sqrt(6 / ((1 + a^2) * fan_in)) = sqrt(3/fan_in)
    b1 = math.sqrt(3.0 / in_channel)
    w1 = jax.random.uniform(k1, (mid_channel, in_channel, 1, 1),
                            jnp.float32, -b1, b1)
    b2 = math.sqrt(3.0 / (mid_channel * 9))
    w2 = jax.random.uniform(k2, (out_channel, mid_channel, 3, 3),
                            jnp.float32, -b2, b2)
    params = {
        "w1": w1,
        "w2": w2,
        "bn1": (jnp.ones(mid_channel), jnp.zeros(mid_channel),
                jnp.zeros(mid_channel), jnp.ones(mid_channel)),
        "bn2": (jnp.ones(out_channel), jnp.zeros(out_channel),
                jnp.zeros(out_channel), jnp.ones(out_channel)),
    }
    if fuse:
        # PyTorch default Conv2d init: kaiming_uniform(a=sqrt(5)) -> 1/sqrt(fan_in)
        ba_bound = 1.0 / math.sqrt(2 * mid_channel)
        params["wa"] = jax.random.uniform(k3, (2, 2 * mid_channel, 1, 1),
                                          jnp.float32, -ba_bound, ba_bound)
        params["ba"] = jax.random.uniform(k4, (2,), jnp.float32,
                                          -ba_bound, ba_bound)
    return params


# ----------------------------------------------------------------------------
if __name__ == "__main__":
    in_channel, mid_channel, out_channel = 4, 8, 8
    N, H, W = 2, 16, 16            # x spatial
    shape = 16                     # target spatial for y upsample (== H)
    out_shape = 8                  # forces the nearest-downsample path

    key = jax.random.PRNGKey(0)
    kx, ky, kp = jax.random.split(key, 3)
    x = jax.random.normal(kx, (N, in_channel, H, W), jnp.float32)      # NCHW
    y = jax.random.normal(ky, (N, mid_channel, 8, 8), jnp.float32)     # NCHW

    params = make_params(in_channel, mid_channel, out_channel, fuse=True, key=kp)

    y_out, x_out = abf_forward(x, params, y_nchw=y, shape=shape,
                               out_shape=out_shape)
    jax.block_until_ready((y_out, x_out))

    assert y_out.shape == (N, out_channel, out_shape, out_shape)
    assert x_out.shape == (N, mid_channel, out_shape, out_shape)
    assert bool(jnp.all(jnp.isfinite(y_out))) and bool(jnp.all(jnp.isfinite(x_out)))
    print("KERNEL_OK")
</pallas_src>

<mosaic_0001>
module attributes {stable_mosaic.version = 11 : i64} {
  func.func @_conv1x1_bn_att_fuse_kernel(%arg0: i32, %arg1: memref<512x4xf32, #tpu.memory_space<vmem>>, %arg2: memref<512x8xf32, #tpu.memory_space<vmem>>, %arg3: memref<4x8xf32, #tpu.memory_space<vmem>>, %arg4: memref<1x8xf32, #tpu.memory_space<vmem>>, %arg5: memref<1x8xf32, #tpu.memory_space<vmem>>, %arg6: memref<8x2xf32, #tpu.memory_space<vmem>>, %arg7: memref<8x2xf32, #tpu.memory_space<vmem>>, %arg8: memref<1x2xf32, #tpu.memory_space<vmem>>, %arg9: memref<512x8xf32, #tpu.memory_space<vmem>>) attributes {dimension_semantics = [#tpu.dimension_semantics<parallel>], iteration_bounds = array<i64: 1>, scalar_prefetch = 0 : i64, scratch_operands = 0 : i64, tpu.core_type = #tpu.core_type<tc>, window_params = [{transform_indices = @transform_0, window_bounds = array<i64: 512, 4>}, {transform_indices = @transform_1, window_bounds = array<i64: 512, 8>}, {pipeline_mode = #tpu.pipeline_mode<synchronous>, transform_indices = @transform_2, window_bounds = array<i64: 4, 8>}, {pipeline_mode = #tpu.pipeline_mode<synchronous>, transform_indices = @transform_3, window_bounds = array<i64: 1, 8>}, {pipeline_mode = #tpu.pipeline_mode<synchronous>, transform_indices = @transform_4, window_bounds = array<i64: 1, 8>}, {pipeline_mode = #tpu.pipeline_mode<synchronous>, transform_indices = @transform_5, window_bounds = array<i64: 8, 2>}, {pipeline_mode = #tpu.pipeline_mode<synchronous>, transform_indices = @transform_6, window_bounds = array<i64: 8, 2>}, {pipeline_mode = #tpu.pipeline_mode<synchronous>, transform_indices = @transform_7, window_bounds = array<i64: 1, 2>}, {transform_indices = @transform_8, window_bounds = array<i64: 512, 8>}]} {
    %c0 = arith.constant 0 : index
    %c0_0 = arith.constant 0 : index
    %0 = vector.load %arg1[%c0, %c0_0] : memref<512x4xf32, #tpu.memory_space<vmem>>, vector<512x4xf32>
    %c0_1 = arith.constant 0 : index
    %c0_2 = arith.constant 0 : index
    %1 = vector.load %arg3[%c0_1, %c0_2] : memref<4x8xf32, #tpu.memory_space<vmem>>, vector<4x8xf32>
    %cst = arith.constant dense<0.000000e+00> : vector<512x8xf32>
    %2 = tpu.matmul %0, %1, %cst {dimension_numbers = #tpu.dot_dimension_numbers<[1], [0], [0], [1], [0, 0, 1, 1], [], []>} : vector<512x4xf32>, vector<4x8xf32>, vector<512x8xf32> -> vector<512x8xf32>
    %c0_3 = arith.constant 0 : index
    %c0_4 = arith.constant 0 : index
    %3 = vector.load %arg4[%c0_3, %c0_4] : memref<1x8xf32, #tpu.memory_space<vmem>>, vector<1x8xf32>
    %4 = vector.broadcast %3 : vector<1x8xf32> to vector<512x8xf32>
    %5 = arith.mulf %2, %4 : vector<512x8xf32>
    %c0_5 = arith.constant 0 : index
    %c0_6 = arith.constant 0 : index
    %6 = vector.load %arg5[%c0_5, %c0_6] : memref<1x8xf32, #tpu.memory_space<vmem>>, vector<1x8xf32>
    %7 = vector.broadcast %6 : vector<1x8xf32> to vector<512x8xf32>
    %8 = arith.addf %5, %7 : vector<512x8xf32>
    %c0_7 = arith.constant 0 : index
    %c0_8 = arith.constant 0 : index
    %9 = vector.load %arg2[%c0_7, %c0_8] : memref<512x8xf32, #tpu.memory_space<vmem>>, vector<512x8xf32>
    %c0_9 = arith.constant 0 : index
    %c0_10 = arith.constant 0 : index
    %10 = vector.load %arg6[%c0_9, %c0_10] : memref<8x2xf32, #tpu.memory_space<vmem>>, vector<8x2xf32>
    %cst_11 = arith.constant dense<0.000000e+00> : vector<512x2xf32>
    %11 = tpu.matmul %8, %10, %cst_11 {dimension_numbers = #tpu.dot_dimension_numbers<[1], [0], [0], [1], [0, 0, 1, 1], [], []>} : vector<512x8xf32>, vector<8x2xf32>, vector<512x2xf32> -> vector<512x2xf32>
    %c0_12 = arith.constant 0 : index
    %c0_13 = arith.constant 0 : index
    %12 = vector.load %arg7[%c0_12, %c0_13] : memref<8x2xf32, #tpu.memory_space<vmem>>, vector<8x2xf32>
    %cst_14 = arith.constant dense<0.000000e+00> : vector<512x2xf32>
    %13 = tpu.matmul %9, %12, %cst_14 {dimension_numbers = #tpu.dot_dimension_numbers<[1], [0], [0], [1], [0, 0, 1, 1], [], []>} : vector<512x8xf32>, vector<8x2xf32>, vector<512x2xf32> -> vector<512x2xf32>
    %14 = arith.addf %11, %13 : vector<512x2xf32>
    %c0_15 = arith.constant 0 : index
    %c0_16 = arith.constant 0 : index
    %15 = vector.load %arg8[%c0_15, %c0_16] : memref<1x2xf32, #tpu.memory_space<vmem>>, vector<1x2xf32>
    %16 = vector.broadcast %15 : vector<1x2xf32> to vector<512x2xf32>
    %17 = arith.addf %14, %16 : vector<512x2xf32>
    %18 = arith.negf %17 : vector<512x2xf32>
    %19 = math.exp %18 : vector<512x2xf32>
    %cst_17 = arith.constant 1.000000e+00 : f32
    %20 = vector.broadcast %cst_17 : f32 to vector<512x2xf32>
    %21 = arith.addf %20, %19 : vector<512x2xf32>
    %22 = arith.divf %20, %21 : vector<512x2xf32>
    %23 = vector.extract_strided_slice %22 {offsets = [0, 0], sizes = [512, 1], strides = [1, 1]} : vector<512x2xf32> to vector<512x1xf32>
    %24 = vector.broadcast %23 : vector<512x1xf32> to vector<512x8xf32>
    %25 = arith.mulf %8, %24 : vector<512x8xf32>
    %26 = vector.extract_strided_slice %22 {offsets = [0, 1], sizes = [512, 1], strides = [1, 1]} : vector<512x2xf32> to vector<512x1xf32>
    %27 = vector.broadcast %26 : vector<512x1xf32> to vector<512x8xf32>
    %28 = arith.mulf %9, %27 : vector<512x8xf32>
    %29 = arith.addf %25, %28 : vector<512x8xf32>
    %c0_18 = arith.constant 0 : index
    %c0_19 = arith.constant 0 : index
    %30 = vector.load %arg9[%c0_18, %c0_19] : memref<512x8xf32, #tpu.memory_space<vmem>>, vector<512x8xf32>
    tpu.vector_store %arg9[%c0_18, %c0_19], %29 {strides = array<i32>} : memref<512x8xf32, #tpu.memory_space<vmem>>, vector<512x8xf32>,
    return
  }
  func.func @transform_0(%arg0: i32) -> (i32, i32) {
    %c0_i32 = arith.constant 0 : i32
    %c0_i32_0 = arith.constant 0 : i32
    return %arg0, %c0_i32 : i32, i32
  }
  func.func @transform_1(%arg0: i32) -> (i32, i32) {
    %c0_i32 = arith.constant 0 : i32
    %c0_i32_0 = arith.constant 0 : i32
    return %arg0, %c0_i32 : i32, i32
  }
  func.func @transform_2(%arg0: i32) -> (i32, i32) {
    %c0_i32 = arith.constant 0 : i32
    %c0_i32_0 = arith.constant 0 : i32
    %c0_i32_1 = arith.constant 0 : i32
    return %c0_i32, %c0_i32_0 : i32, i32
  }
  func.func @transform_3(%arg0: i32) -> (i32, i32) {
    %c0_i32 = arith.constant 0 : i32
    %c0_i32_0 = arith.constant 0 : i32
    %c0_i32_1 = arith.constant 0 : i32
    return %c0_i32, %c0_i32_0 : i32, i32
  }
  func.func @transform_4(%arg0: i32) -> (i32, i32) {
    %c0_i32 = arith.constant 0 : i32
    %c0_i32_0 = arith.constant 0 : i32
    %c0_i32_1 = arith.constant 0 : i32
    return %c0_i32, %c0_i32_0 : i32, i32
  }
  func.func @transform_5(%arg0: i32) -> (i32, i32) {
    %c0_i32 = arith.constant 0 : i32
    %c0_i32_0 = arith.constant 0 : i32
    %c0_i32_1 = arith.constant 0 : i32
    return %c0_i32, %c0_i32_0 : i32, i32
  }
  func.func @transform_6(%arg0: i32) -> (i32, i32) {
    %c0_i32 = arith.constant 0 : i32
    %c0_i32_0 = arith.constant 0 : i32
    %c0_i32_1 = arith.constant 0 : i32
    return %c0_i32, %c0_i32_0 : i32, i32
  }
  func.func @transform_7(%arg0: i32) -> (i32, i32) {
    %c0_i32 = arith.constant 0 : i32
    %c0_i32_0 = arith.constant 0 : i32
    %c0_i32_1 = arith.constant 0 : i32
    return %c0_i32, %c0_i32_0 : i32, i32
  }
  func.func @transform_8(%arg0: i32) -> (i32, i32) {
    %c0_i32 = arith.constant 0 : i32
    %c0_i32_0 = arith.constant 0 : i32
    return %arg0, %c0_i32 : i32, i32
  }
}

</mosaic_0001>

<bundles_post_ra>
// kernel: tpu_custom_call.1
= control target key start
LH: loop header
LB: loop body
LE: loop exit
PB: predicated region body
PF: predicated region fallthrough
CT: control target
= control target key end

     0   :  { %vm287_vm0 = vcmask 1043456   ;;  %vm94_vm1 = vcmask 31744   ;;  %vm884_vm2 = vcmask 64512   ;;  %s6249_s2 = inlined_call_operand.vmem [shape: f32[4,8], index: 2, kind: input, shape index: {}]   ;;  %s6250_s0 = inlined_call_operand.vmem [shape: f32[512,4], index: 0, kind: input, shape index: {}]   ;;  %s6251_s6 = inlined_call_operand.vmem [shape: f32[8,2], index: 6, kind: input, shape index: {}]   ;;  %s6252_s5 = inlined_call_operand.vmem [shape: f32[8,2], index: 5, kind: input, shape index: {}]   ;;  %s6253_s1 = inlined_call_operand.vmem [shape: f32[512,8], index: 1, kind: input, shape index: {}]   ;;  %s6254_s3 = inlined_call_operand.vmem [shape: f32[1,8], index: 3, kind: input, shape index: {}]   ;;  %s6255_s4 = inlined_call_operand.vmem [shape: f32[1,8], index: 4, kind: input, shape index: {}]   ;;  %s6256_s7 = inlined_call_operand.vmem [shape: f32[1,2], index: 7, kind: input, shape index: {}]   ;;  %s6257_s8 = inlined_call_operand.vmem [shape: f32[512,8], index: 8, kind: output, shape index: {}]  }
   0x1   :  { %v93_v0 = vld [vmem:[%s6249_s2] sm:$0xf]  ;;  %v30_v2 = vld [vmem:[%s6250_s0 + $0x8] sm:$0xff]  ;;  %v31_v3 = vld [vmem:[%s6250_s0 + $0x10] sm:$0xff] }
   0x2   :  { %v29_v1 = vld [vmem:[%s6250_s0] sm:$0xff]  ;;  %3785 = vmatprep.subr.msk.mxu0 %vm287_vm0, %v93_v0  ;;  %4079 = vmatprep.subr.msk.mxu1 %vm287_vm0, %v93_v0  ;;  %v32_v4 = vld [vmem:[%s6250_s0 + $0x18] sm:$0xff]  ;;  %v34_v6 = vld [vmem:[%s6250_s0 + $0x28] sm:$0xff] }
   0x3   :  { %3787 = vmatprep.mubr.msk.f32.mxu0 %vm94_vm1, %v29_v1  ;;  %3786 = vmatpush3.msk.msra.mxu0 %vm287_vm0, %v93_v0  ;;  %v33_v5 = vld [vmem:[%s6250_s0 + $0x20] sm:$0xff]  ;;  %v35_v7 = vld [vmem:[%s6250_s0 + $0x30] sm:$0xff]  ;;  %v62_v9 = vld [vmem:[%s6250_s0 + $0x108] sm:$0xff] }
   0x4   :  { %3788 = vmatmul.mubr.msk.f32.vlgmr.msra.gmra.mxu0 %vm94_vm1, %v30_v2  ;;  %4080 = vmatpush3.msk.msra.mxu1 %vm287_vm0, %v93_v0  ;;  %v61_v8 = vld [vmem:[%s6250_s0 + $0x100] sm:$0xff]  ;;  %v63_v10 = vld [vmem:[%s6250_s0 + $0x110] sm:$0xff]  ;;  %v36_v11 = vld [vmem:[%s6250_s0 + $0x38] sm:$0xff] }
   0x5   :  { %3790 = vmatprep.mubr.msk.f32.mxu0 %vm94_vm1, %v31_v3  ;;  %3835 = vmatprep.mubr.msk.f32.mxu1 %vm94_vm1, %v61_v8  ;;  %v883_v12 = vld [vmem:[%s6251_s6] sm:$0xff]  ;;  %v64_v15 = vld [vmem:[%s6250_s0 + $0x118] sm:$0xff]  ;;  %v38_v17 = vld [vmem:[%s6250_s0 + $0x48] sm:$0xff] }
   0x6   :  { %v882_v13 = vld [vmem:[%s6252_s5] sm:$0xff]  ;;  %3836 = vmatmul.mubr.msk.f32.vlgmr.msra.gmra.mxu1 %vm94_vm1, %v62_v9  ;;  %3883 = vmatprep.subr.mxu1 %v883_v12  ;;  %v39_v18 = vld [vmem:[%s6250_s0 + $0x50] sm:$0xff]  ;;  %v66_v19 = vld [vmem:[%s6250_s0 + $0x128] sm:$0xff] }
   0x7   :  { %v37_v14 = vld [vmem:[%s6250_s0 + $0x40] sm:$0xff]  ;;  %3838 = vmatprep.mubr.msk.f32.mxu1 %vm94_vm1, %v63_v10  ;;  %3981 = vmatprep.subr.mxu0 %v882_v13  ;;  %v67_v20 = vld [vmem:[%s6250_s0 + $0x130] sm:$0xff]  ;;  %v40_v21 = vld [vmem:[%s6250_s0 + $0x58] sm:$0xff] }
   0x8   :  { %3791 = vmatmul.mubr.msk.f32.gmra.mxu0 %vm94_vm1, %v32_v4  ;;  %3884 = vmatpush3.msra.mxu1 %v883_v12  ;;  %v65_v16 = vld [vmem:[%s6250_s0 + $0x120] sm:$0xff]  ;;  %v68_v23 = vld [vmem:[%s6250_s0 + $0x138] sm:$0xff]  ;;  %v42_v25 = vld [vmem:[%s6250_s0 + $0x68] sm:$0xff] }
   0x9   :  { %3793 = vmatprep.mubr.msk.f32.mxu0 %vm94_vm1, %v33_v5  ;;  %3982 = vmatpush3.msra.mxu0 %v882_v13  ;;  %v41_v22 = vld [vmem:[%s6250_s0 + $0x60] sm:$0xff]  ;;  %v43_v26 = vld [vmem:[%s6250_s0 + $0x70] sm:$0xff]  ;;  %v70_v27 = vld [vmem:[%s6250_s0 + $0x148] sm:$0xff] }
   0xa   :  { %3839 = vmatmul.mubr.msk.f32.gmra.mxu1 %vm94_vm1, %v64_v15  ;;  %v69_v24 = vld [vmem:[%s6250_s0 + $0x140] sm:$0xff]  ;;  %v71_v28 = vld [vmem:[%s6250_s0 + $0x150] sm:$0xff]  ;;  %v44_v29 = vld [vmem:[%s6250_s0 + $0x78] sm:$0xff] }
   0xb   :  { %3841 = vmatprep.mubr.msk.f32.mxu1 %vm94_vm1, %v65_v16  ;;  %v45_v30 = vld [vmem:[%s6250_s0 + $0x80] sm:$0xff]  ;;  %v72_v31 = vld [vmem:[%s6250_s0 + $0x158] sm:$0xff]  ;;  %v46_v33 = vld [vmem:[%s6250_s0 + $0x88] sm:$0xff] }
   0xc   :  { %3794 = vmatmul.mubr.msk.f32.gmra.mxu0 %vm94_vm1, %v34_v6  ;;  %v73_v32 = vld [vmem:[%s6250_s0 + $0x160] sm:$0xff]  ;;  %v47_v34 = vld [vmem:[%s6250_s0 + $0x90] sm:$0xff]  ;;  %v74_v35 = vld [vmem:[%s6250_s0 + $0x168] sm:$0xff] }
   0xd   :  { %3796 = vmatprep.mubr.msk.f32.mxu0 %vm94_vm1, %v35_v7  ;;  %v75_v36 = vld [vmem:[%s6250_s0 + $0x170] sm:$0xff]  ;;  %v48_v37 = vld [vmem:[%s6250_s0 + $0x98] sm:$0xff]  ;;  %v49_v38 = vld [vmem:[%s6250_s0 + $0xa0] sm:$0xff] }
   0xe   :  { %3842 = vmatmul.mubr.msk.f32.gmra.mxu1 %vm94_vm1, %v66_v19  ;;  %v76_v39 = vld [vmem:[%s6250_s0 + $0x178] sm:$0xff]  ;;  %v77_v40 = vld [vmem:[%s6250_s0 + $0x180] sm:$0xff]  ;;  %v50_v41 = vld [vmem:[%s6250_s0 + $0xa8] sm:$0xff] }
   0xf   :  { %3844 = vmatprep.mubr.msk.f32.mxu1 %vm94_vm1, %v67_v20  ;;  %v51_v42 = vld [vmem:[%s6250_s0 + $0xb0] sm:$0xff]  ;;  %v78_v43 = vld [vmem:[%s6250_s0 + $0x188] sm:$0xff]  ;;  %v52_v45 = vld [vmem:[%s6250_s0 + $0xb8] sm:$0xff] }
  0x10   :  { %3797 = vmatmul.mubr.msk.f32.gmra.mxu0 %vm94_vm1, %v36_v11  ;;  %v79_v44 = vld [vmem:[%s6250_s0 + $0x190] sm:$0xff]  ;;  %v53_v46 = vld [vmem:[%s6250_s0 + $0xc0] sm:$0xff]  ;;  %v80_v47 = vld [vmem:[%s6250_s0 + $0x198] sm:$0xff] }
  0x11   :  { %3799 = vmatprep.mubr.msk.f32.mxu0 %vm94_vm1, %v37_v14  ;;  %v81_v48 = vld [vmem:[%s6250_s0 + $0x1a0] sm:$0xff]  ;;  %v54_v49 = vld [vmem:[%s6250_s0 + $0xc8] sm:$0xff]  ;;  %v55_v50 = vld [vmem:[%s6250_s0 + $0xd0] sm:$0xff] }
  0x12   :  { %3845 = vmatmul.mubr.msk.f32.gmra.mxu1 %vm94_vm1, %v68_v23  ;;  %v82_v51 = vld [vmem:[%s6250_s0 + $0x1a8] sm:$0xff]  ;;  %v83_v52 = vld [vmem:[%s6250_s0 + $0x1b0] sm:$0xff]  ;;  %v56_v53 = vld [vmem:[%s6250_s0 + $0xd8] sm:$0xff] }
  0x13   :  { %3847 = vmatprep.mubr.msk.f32.mxu1 %vm94_vm1, %v69_v24  ;;  %v57_v54 = vld [vmem:[%s6250_s0 + $0xe0] sm:$0xff]  ;;  %v84_v55 = vld [vmem:[%s6250_s0 + $0x1b8] sm:$0xff]  ;;  %v58_v57 = vld [vmem:[%s6250_s0 + $0xe8] sm:$0xff] }
  0x14   :  { %3800 = vmatmul.mubr.msk.f32.gmra.mxu0 %vm94_vm1, %v38_v17  ;;  %v85_v56 = vld [vmem:[%s6250_s0 + $0x1c0] sm:$0xff]  ;;  %v59_v58 = vld [vmem:[%s6250_s0 + $0xf0] sm:$0xff]  ;;  %v86_v59 = vld [vmem:[%s6250_s0 + $0x1c8] sm:$0xff] }
  0x15   :  { %3802 = vmatprep.mubr.msk.f32.mxu0 %vm94_vm1, %v39_v18  ;;  %v87_v60 = vld [vmem:[%s6250_s0 + $0x1d0] sm:$0xff]  ;;  %v60_v61 = vld [vmem:[%s6250_s0 + $0xf8] sm:$0xff]  ;;  %v89_v63 = vld [vmem:[%s6250_s0 + $0x1e0] sm:$0xff] }
  0x16   :  { %3848 = vmatmul.mubr.msk.f32.gmra.mxu1 %vm94_vm1, %v70_v27  ;;  %v88_v62 = vld [vmem:[%s6250_s0 + $0x1d8] sm:$0xff]  ;;  %v90_v0 = vld [vmem:[%s6250_s0 + $0x1e8] sm:$0xff]  ;;  %v91_v1 = vld [vmem:[%s6250_s0 + $0x1f0] sm:$0xff] }
  0x17   :  { %3850 = vmatprep.mubr.msk.f32.mxu1 %vm94_vm1, %v71_v28  ;;  %v92_v2 = vld [vmem:[%s6250_s0 + $0x1f8] sm:$0xff]  ;;  %v818_v3 = vld [vmem:[%s6253_s1] sm:$0xff]  ;;  %v819_v4 = vld [vmem:[%s6253_s1 + $0x8] sm:$0xff] }
  0x18   :  { %3803 = vmatmul.mubr.msk.f32.gmra.mxu0 %vm94_vm1, %v40_v21  ;;  %v820_v5 = vld [vmem:[%s6253_s1 + $0x10] sm:$0xff]  ;;  %v821_v6 = vld [vmem:[%s6253_s1 + $0x18] sm:$0xff]  ;;  %v822_v7 = vld [vmem:[%s6253_s1 + $0x20] sm:$0xff] }
  0x19   :  { %3805 = vmatprep.mubr.msk.f32.mxu0 %vm94_vm1, %v41_v22  ;;  %v823_v8 = vld [vmem:[%s6253_s1 + $0x28] sm:$0xff]  ;;  %v824_v9 = vld [vmem:[%s6253_s1 + $0x30] sm:$0xff]  ;;  %v825_v10 = vld [vmem:[%s6253_s1 + $0x38] sm:$0xff] }
  0x1a   :  { %3851 = vmatmul.mubr.msk.f32.gmra.mxu1 %vm94_vm1, %v72_v31  ;;  %v826_v11 = vld [vmem:[%s6253_s1 + $0x40] sm:$0xff]  ;;  %v827_v12 = vld [vmem:[%s6253_s1 + $0x48] sm:$0xff]  ;;  %v828_v13 = vld [vmem:[%s6253_s1 + $0x50] sm:$0xff] }
  0x1b   :  { %3853 = vmatprep.mubr.msk.f32.mxu1 %vm94_vm1, %v73_v32  ;;  %v829_v14 = vld [vmem:[%s6253_s1 + $0x58] sm:$0xff]  ;;  %v830_v15 = vld [vmem:[%s6253_s1 + $0x60] sm:$0xff]  ;;  %v831_v16 = vld [vmem:[%s6253_s1 + $0x68] sm:$0xff] }
  0x1c   :  { %3806 = vmatmul.mubr.msk.f32.gmra.mxu0 %vm94_vm1, %v42_v25  ;;  %v832_v17 = vld [vmem:[%s6253_s1 + $0x70] sm:$0xff]  ;;  %v833_v18 = vld [vmem:[%s6253_s1 + $0x78] sm:$0xff]  ;;  %v834_v19 = vld [vmem:[%s6253_s1 + $0x80] sm:$0xff] }
  0x1d   :  { %3808 = vmatprep.mubr.msk.f32.mxu0 %vm94_vm1, %v43_v26  ;;  %v835_v20 = vld [vmem:[%s6253_s1 + $0x88] sm:$0xff]  ;;  %v836_v21 = vld [vmem:[%s6253_s1 + $0x90] sm:$0xff]  ;;  %v837_v22 = vld [vmem:[%s6253_s1 + $0x98] sm:$0xff] }
  0x1e   :  { %3854 = vmatmul.mubr.msk.f32.gmra.mxu1 %vm94_vm1, %v74_v35  ;;  %v838_v23 = vld [vmem:[%s6253_s1 + $0xa0] sm:$0xff]  ;;  %v839_v24 = vld [vmem:[%s6253_s1 + $0xa8] sm:$0xff]  ;;  %v840_v25 = vld [vmem:[%s6253_s1 + $0xb0] sm:$0xff] }
  0x1f   :  { %3856 = vmatprep.mubr.msk.f32.mxu1 %vm94_vm1, %v75_v36  ;;  %v841_v26 = vld [vmem:[%s6253_s1 + $0xb8] sm:$0xff]  ;;  %v842_v27 = vld [vmem:[%s6253_s1 + $0xc0] sm:$0xff]  ;;  %v843_v28 = vld [vmem:[%s6253_s1 + $0xc8] sm:$0xff] }
  0x20   :  { %3809 = vmatmul.mubr.msk.f32.gmra.mxu0 %vm94_vm1, %v44_v29  ;;  %v844_v29 = vld [vmem:[%s6253_s1 + $0xd0] sm:$0xff]  ;;  %v846_v31 = vld [vmem:[%s6253_s1 + $0xe0] sm:$0xff]  ;;  %v847_v32 = vld [vmem:[%s6253_s1 + $0xe8] sm:$0xff] }
  0x21   :  { %3811 = vmatprep.mubr.msk.f32.mxu0 %vm94_vm1, %v45_v30  ;;  %v845_v30 = vld [vmem:[%s6253_s1 + $0xd8] sm:$0xff]  ;;  %v850_v35 = vld [vmem:[%s6253_s1 + $0x100] sm:$0xff]  ;;  %v851_v36 = vld [vmem:[%s6253_s1 + $0x108] sm:$0xff] }
  0x22   :  { %3857 = vmatmul.mubr.msk.f32.gmra.mxu1 %vm94_vm1, %v76_v39  ;;  %v854_v39 = vld [vmem:[%s6253_s1 + $0x120] sm:$0xff] }
  0x23   :  { %3859 = vmatprep.mubr.msk.f32.mxu1 %vm94_vm1, %v77_v40  ;;  %v855_v40 = vld [vmem:[%s6253_s1 + $0x128] sm:$0xff] }
  0x24   :  { %3812 = vmatmul.mubr.msk.f32.gmra.mxu0 %vm94_vm1, %v46_v33  ;;  %v848_v33 = vld [vmem:[%s6253_s1 + $0xf0] sm:$0xff] }
  0x25   :  { %3814 = vmatprep.mubr.msk.f32.mxu0 %vm94_vm1, %v47_v34  ;;  %v849_v34 = vld [vmem:[%s6253_s1 + $0xf8] sm:$0xff] }
  0x26   :  { %3860 = vmatmul.mubr.msk.f32.gmra.mxu1 %vm94_vm1, %v78_v43  ;;  %v858_v43 = vld [vmem:[%s6253_s1 + $0x140] sm:$0xff] }
  0x27   :  { %3862 = vmatprep.mubr.msk.f32.mxu1 %vm94_vm1, %v79_v44  ;;  %v859_v44 = vld [vmem:[%s6253_s1 + $0x148] sm:$0xff] }
  0x28   :  { %3815 = vmatmul.mubr.msk.f32.gmra.mxu0 %vm94_vm1, %v48_v37  ;;  %v852_v37 = vld [vmem:[%s6253_s1 + $0x110] sm:$0xff] }
  0x29   :  { %3817 = vmatprep.mubr.msk.f32.mxu0 %vm94_vm1, %v49_v38  ;;  %v853_v38 = vld [vmem:[%s6253_s1 + $0x118] sm:$0xff] }
  0x2a   :  { %3863 = vmatmul.mubr.msk.f32.gmra.mxu1 %vm94_vm1, %v80_v47  ;;  %v862_v47 = vld [vmem:[%s6253_s1 + $0x160] sm:$0xff] }
  0x2b   :  { %3865 = vmatprep.mubr.msk.f32.mxu1 %vm94_vm1, %v81_v48  ;;  %v863_v48 = vld [vmem:[%s6253_s1 + $0x168] sm:$0xff] }
  0x2c   :  { %3818 = vmatmul.mubr.msk.f32.gmra.mxu0 %vm94_vm1, %v50_v41  ;;  %v856_v41 = vld [vmem:[%s6253_s1 + $0x130] sm:$0xff] }
  0x2d   :  { %3820 = vmatprep.mubr.msk.f32.mxu0 %vm94_vm1, %v51_v42  ;;  %v857_v42 = vld [vmem:[%s6253_s1 + $0x138] sm:$0xff] }
  0x2e   :  { %3866 = vmatmul.mubr.msk.f32.gmra.mxu1 %vm94_vm1, %v82_v51  ;;  %v866_v51 = vld [vmem:[%s6253_s1 + $0x180] sm:$0xff] }
  0x2f   :  { %3868 = vmatprep.mubr.msk.f32.mxu1 %vm94_vm1, %v83_v52  ;;  %v867_v52 = vld [vmem:[%s6253_s1 + $0x188] sm:$0xff] }
  0x30   :  { %3821 = vmatmul.mubr.msk.f32.gmra.mxu0 %vm94_vm1, %v52_v45  ;;  %v860_v45 = vld [vmem:[%s6253_s1 + $0x150] sm:$0xff] }
  0x31   :  { %3823 = vmatprep.mubr.msk.f32.mxu0 %vm94_vm1, %v53_v46  ;;  %v861_v46 = vld [vmem:[%s6253_s1 + $0x158] sm:$0xff] }
  0x32   :  { %3869 = vmatmul.mubr.msk.f32.gmra.mxu1 %vm94_vm1, %v84_v55  ;;  %v870_v55 = vld [vmem:[%s6253_s1 + $0x1a0] sm:$0xff] }
  0x33   :  { %3871 = vmatprep.mubr.msk.f32.mxu1 %vm94_vm1, %v85_v56  ;;  %v871_v56 = vld [vmem:[%s6253_s1 + $0x1a8] sm:$0xff] }
  0x34   :  { %3824 = vmatmul.mubr.msk.f32.gmra.mxu0 %vm94_vm1, %v54_v49  ;;  %v864_v49 = vld [vmem:[%s6253_s1 + $0x170] sm:$0xff] }
  0x35   :  { %3826 = vmatprep.mubr.msk.f32.mxu0 %vm94_vm1, %v55_v50  ;;  %v865_v50 = vld [vmem:[%s6253_s1 + $0x178] sm:$0xff] }
  0x36   :  { %3872 = vmatmul.mubr.msk.f32.gmra.mxu1 %vm94_vm1, %v86_v59  ;;  %v874_v59 = vld [vmem:[%s6253_s1 + $0x1c0] sm:$0xff] }
  0x37   :  { %3874 = vmatprep.mubr.msk.f32.mxu1 %vm94_vm1, %v87_v60  ;;  %v875_v60 = vld [vmem:[%s6253_s1 + $0x1c8] sm:$0xff] }
  0x38   :  { %3827 = vmatmul.mubr.msk.f32.gmra.mxu0 %vm94_vm1, %v56_v53  ;;  %v868_v53 = vld [vmem:[%s6253_s1 + $0x190] sm:$0xff] }
  0x39   :  { %3829 = vmatprep.mubr.msk.f32.mxu0 %vm94_vm1, %v57_v54  ;;  %v869_v54 = vld [vmem:[%s6253_s1 + $0x198] sm:$0xff] }
  0x3a   :  { %3875 = vmatmul.mubr.msk.f32.gmra.mxu1 %vm94_vm1, %v88_v62  ;;  %v877_v62 = vld [vmem:[%s6253_s1 + $0x1d8] sm:$0xff] }
  0x3b   :  { %3877 = vmatprep.mubr.msk.f32.mxu1 %vm94_vm1, %v89_v63  ;;  %v878_v63 = vld [vmem:[%s6253_s1 + $0x1e0] sm:$0xff] }
  0x3c   :  { %3830 = vmatmul.mubr.msk.f32.gmra.mxu0 %vm94_vm1, %v58_v57  ;;  %v872_v57 = vld [vmem:[%s6253_s1 + $0x1b0] sm:$0xff] }
  0x3d   :  { %3832 = vmatprep.mubr.msk.f32.mxu0 %vm94_vm1, %v59_v58  ;;  %v873_v58 = vld [vmem:[%s6253_s1 + $0x1b8] sm:$0xff] }
  0x3e   :  { %3878 = vmatmul.mubr.msk.f32.gmra.mxu1 %vm94_vm1, %v90_v0  ;;  %v5084_v0 = vld [vmem:[%s6254_s3] ss:$0 sm:$0xff] }
  0x3f   :  { %3880 = vmatprep.mubr.msk.f32.mxu1 %vm94_vm1, %v91_v1 }
  0x40   :  { %3833 = vmatmul.mubr.msk.f32.gmra.mxu0 %vm94_vm1, %v60_v61  ;;  %v876_v61 = vld [vmem:[%s6253_s1 + $0x1d0] sm:$0xff] }
  0x42   :  { %3881 = vmatmul.mubr.msk.f32.gmra.mxu1 %vm94_vm1, %v92_v2  ;;  %v879_v2 = vld [vmem:[%s6253_s1 + $0x1e8] sm:$0xff] }
  0x43   :  { %3885 = vmatprep.mubr.msk.f32.mxu1 %vm884_vm2, %v818_v3 }
  0x46   :  { %3886 = vmatmul.mubr.msk.f32.vlgmr.msra.gmra.mxu1 %vm884_vm2, %v819_v4 }
  0x47   :  { %3888 = vmatprep.mubr.msk.f32.mxu1 %vm884_vm2, %v820_v5  ;;  %v880_v5 = vld [vmem:[%s6253_s1 + $0x1f0] sm:$0xff] }
  0x4a   :  { %3889 = vmatmul.mubr.msk.f32.gmra.mxu1 %vm884_vm2, %v821_v6  ;;  %v5098_v6 = vld [vmem:[%s6255_s4] ss:$0 sm:$0xff] }
  0x4b   :  { %3891 = vmatprep.mubr.msk.f32.mxu1 %vm884_vm2, %v822_v7 }
  0x4e   :  { %3892 = vmatmul.mubr.msk.f32.gmra.mxu1 %vm884_vm2, %v823_v8 }
  0x4f   :  { %3894 = vmatprep.mubr.msk.f32.mxu1 %vm884_vm2, %v824_v9 }
  0x52   :  { %3895 = vmatmul.mubr.msk.f32.gmra.mxu1 %vm884_vm2, %v825_v10  ;;  %v881_v10 = vld [vmem:[%s6253_s1 + $0x1f8] sm:$0xff] }
  0x53   :  { %3897 = vmatprep.mubr.msk.f32.mxu1 %vm884_vm2, %v826_v11 }
  0x56   :  { %3898 = vmatmul.mubr.msk.f32.gmra.mxu1 %vm884_vm2, %v827_v12 }
  0x57   :  { %3900 = vmatprep.mubr.msk.f32.mxu1 %vm884_vm2, %v828_v13 }
  0x5a   :  { %3901 = vmatmul.mubr.msk.f32.gmra.mxu1 %vm884_vm2, %v829_v14 }
  0x5b   :  { %3903 = vmatprep.mubr.msk.f32.mxu1 %vm884_vm2, %v830_v15 }
  0x5e   :  { %3904 = vmatmul.mubr.msk.f32.gmra.mxu1 %vm884_vm2, %v831_v16 }
  0x5f   :  { %3906 = vmatprep.mubr.msk.f32.mxu1 %vm884_vm2, %v832_v17 }
  0x62   :  { %3907 = vmatmul.mubr.msk.f32.gmra.mxu1 %vm884_vm2, %v833_v18 }
  0x63   :  { %3909 = vmatprep.mubr.msk.f32.mxu1 %vm884_vm2, %v834_v19 }
  0x66   :  { %3910 = vmatmul.mubr.msk.f32.gmra.mxu1 %vm884_vm2, %v835_v20 }
  0x67   :  { %3912 = vmatprep.mubr.msk.f32.mxu1 %vm884_vm2, %v836_v21 }
  0x6a   :  { %3913 = vmatmul.mubr.msk.f32.gmra.mxu1 %vm884_vm2, %v837_v22 }
  0x6b   :  { %3915 = vmatprep.mubr.msk.f32.mxu1 %vm884_vm2, %v838_v23 }
  0x6e   :  { %3916 = vmatmul.mubr.msk.f32.gmra.mxu1 %vm884_vm2, %v839_v24 }
  0x6f   :  { %3918 = vmatprep.mubr.msk.f32.mxu1 %vm884_vm2, %v840_v25 }
  0x72   :  { %3919 = vmatmul.mubr.msk.f32.gmra.mxu1 %vm884_vm2, %v841_v26 }
  0x73   :  { %3921 = vmatprep.mubr.msk.f32.mxu1 %vm884_vm2, %v842_v27 }
  0x76   :  { %3922 = vmatmul.mubr.msk.f32.gmra.mxu1 %vm884_vm2, %v843_v28 }
  0x77   :  { %3924 = vmatprep.mubr.msk.f32.mxu1 %vm884_vm2, %v844_v29 }
  0x7a   :  { %3925 = vmatmul.mubr.msk.f32.gmra.mxu1 %vm884_vm2, %v845_v30 }
  0x7b   :  { %3927 = vmatprep.mubr.msk.f32.mxu1 %vm884_vm2, %v846_v31 }
  0x7e   :  { %3928 = vmatmul.mubr.msk.f32.gmra.mxu1 %vm884_vm2, %v847_v32 }
  0x7f   :  { %3930 = vmatprep.mubr.msk.f32.mxu1 %vm884_vm2, %v848_v33 }
  0x82   :  { %3931 = vmatmul.mubr.msk.f32.gmra.mxu1 %vm884_vm2, %v849_v34 }
  0x83   :  { %3933 = vmatprep.mubr.msk.f32.mxu1 %vm884_vm2, %v850_v35 }
  0x86   :  { %3934 = vmatmul.mubr.msk.f32.gmra.mxu1 %vm884_vm2, %v851_v36 }
  0x87   :  { %3936 = vmatprep.mubr.msk.f32.mxu1 %vm884_vm2, %v852_v37 }
  0x8a   :  { %3937 = vmatmul.mubr.msk.f32.gmra.mxu1 %vm884_vm2, %v853_v38 }
  0x8b   :  { %3939 = vmatprep.mubr.msk.f32.mxu1 %vm884_vm2, %v854_v39 }
  0x8e   :  { %3940 = vmatmul.mubr.msk.f32.gmra.mxu1 %vm884_vm2, %v855_v40 }
  0x8f   :  { %3942 = vmatprep.mubr.msk.f32.mxu1 %vm884_vm2, %v856_v41 }
  0x92   :  { %3943 = vmatmul.mubr.msk.f32.gmra.mxu1 %vm884_vm2, %v857_v42 }
  0x93   :  { %3945 = vmatprep.mubr.msk.f32.mxu1 %vm884_vm2, %v858_v43 }
  0x96   :  { %3946 = vmatmul.mubr.msk.f32.gmra.mxu1 %vm884_vm2, %v859_v44 }
  0x97   :  { %3948 = vmatprep.mubr.msk.f32.mxu1 %vm884_vm2, %v860_v45 }
  0x9a   :  { %3949 = vmatmul.mubr.msk.f32.gmra.mxu1 %vm884_vm2, %v861_v46 }
  0x9b   :  { %3951 = vmatprep.mubr.msk.f32.mxu1 %vm884_vm2, %v862_v47 }
  0x9e   :  { %3952 = vmatmul.mubr.msk.f32.gmra.mxu1 %vm884_vm2, %v863_v48 }
  0x9f   :  { %3954 = vmatprep.mubr.msk.f32.mxu1 %vm884_vm2, %v864_v49 }
  0xa2   :  { %3955 = vmatmul.mubr.msk.f32.gmra.mxu1 %vm884_vm2, %v865_v50 }
  0xa3   :  { %3957 = vmatprep.mubr.msk.f32.mxu1 %vm884_vm2, %v866_v51 }
  0xa6   :  { %3958 = vmatmul.mubr.msk.f32.gmra.mxu1 %vm884_vm2, %v867_v52 }
  0xa7   :  { %3960 = vmatprep.mubr.msk.f32.mxu1 %vm884_vm2, %v868_v53 }
  0xaa   :  { %3961 = vmatmul.mubr.msk.f32.gmra.mxu1 %vm884_vm2, %v869_v54 }
  0xab   :  { %3963 = vmatprep.mubr.msk.f32.mxu1 %vm884_vm2, %v870_v55 }
  0xae   :  { %3964 = vmatmul.mubr.msk.f32.gmra.mxu1 %vm884_vm2, %v871_v56 }
  0xaf   :  { %3966 = vmatprep.mubr.msk.f32.mxu1 %vm884_vm2, %v872_v57 }
  0xb2   :  { %3967 = vmatmul.mubr.msk.f32.gmra.mxu1 %vm884_vm2, %v873_v58 }
  0xb3   :  { %3969 = vmatprep.mubr.msk.f32.mxu1 %vm884_vm2, %v874_v59 }
  0xb6   :  { %3970 = vmatmul.mubr.msk.f32.gmra.mxu1 %vm884_vm2, %v875_v60 }
  0xb7   :  { %3972 = vmatprep.mubr.msk.f32.mxu1 %vm884_vm2, %v876_v61 }
  0xba   :  { %3973 = vmatmul.mubr.msk.f32.gmra.mxu1 %vm884_vm2, %v877_v62 }
  0xbb   :  { %3975 = vmatprep.mubr.msk.f32.mxu1 %vm884_vm2, %v878_v63 }
  0xbe   :  { %3976 = vmatmul.mubr.msk.f32.gmra.mxu1 %vm884_vm2, %v879_v2 }
  0xbf   :  { %3978 = vmatprep.mubr.msk.f32.mxu1 %vm884_vm2, %v880_v5 }
  0xc2   :  { %3979 = vmatmul.mubr.msk.f32.gmra.mxu1 %vm884_vm2, %v881_v10 }
  0xc4   :  { %v3789_v1 = vpop.f32.mrf.mxu0 }
  0xc5   :  { %v684_v3 = vmul.f32 %v3789_v1, %v5084_v0 }
  0xc6   :  { %v357_v4 = vpop.f32.mrf.mxu0  ;;  %v5126_v20 = vpop.f32.mrf.mxu1 }
  0xc7   :  { %v683_v7 = vmul.f32 %v5084_v0, %v357_v4  ;;  %v5110_v11 = vadd.f32 %v5098_v6, %v684_v3 }
  0xc8   :  { %v3792_v8 = vpop.f32.mrf.mxu0  ;;  %v5136_v24 = vpop.f32.mrf.mxu1 }
  0xc9   :  { %v5103_v9 = vadd.f32 %v5098_v6, %v683_v7  ;;  %v686_v12 = vmul.f32 %v3792_v8, %v5084_v0 }
  0xca   :  { %v367_v13 = vpop.f32.mrf.mxu0  ;;  %v5142_v28 = vpop.f32.mrf.mxu1 }
  0xcb   :  { %v685_v14 = vmul.f32 %v5084_v0, %v367_v13  ;;  %3983 = vmatprep.mubr.msk.f32.mxu0 %vm884_vm2, %v5103_v9  ;;  %v5124_v18 = vadd.f32 %v5098_v6, %v686_v12 }
  0xcc   :  { %3984 = vmatmul.mubr.msk.f32.vlgmr.msra.gmra.mxu0 %vm884_vm2, %v5110_v11  ;;  %v3795_v15 = vpop.f32.mrf.mxu0  ;;  %v5152_v32 = vpop.f32.mrf.mxu1 }
  0xcd   :  { %v5120_v16 = vadd.f32 %v5098_v6, %v685_v14  ;;  %v688_v17 = vmul.f32 %v3795_v15, %v5084_v0 }
  0xce   :  { %v377_v19 = vpop.f32.mrf.mxu0  ;;  %v5158_v36 = vpop.f32.mrf.mxu1 }
  0xcf   :  { %3986 = vmatprep.mubr.msk.f32.mxu0 %vm884_vm2, %v5120_v16  ;;  %v687_v21 = vmul.f32 %v5084_v0, %v377_v19  ;;  %v5134_v22 = vadd.f32 %v5098_v6, %v688_v17 }
  0xd0   :  { %3987 = vmatmul.mubr.msk.f32.gmra.mxu0 %vm884_vm2, %v5124_v18  ;;  %v3798_v23 = vpop.f32.mrf.mxu0  ;;  %v5168_v40 = vpop.f32.mrf.mxu1 }
  0xd1   :  { %v5139_v25 = vadd.f32 %v5098_v6, %v687_v21  ;;  %v690_v26 = vmul.f32 %v3798_v23, %v5084_v0 }
  0xd2   :  { %v387_v27 = vpop.f32.mrf.mxu0  ;;  %v5174_v44 = vpop.f32.mrf.mxu1 }
  0xd3   :  { %3989 = vmatprep.mubr.msk.f32.mxu0 %vm884_vm2, %v5139_v25  ;;  %v689_v29 = vmul.f32 %v5084_v0, %v387_v27  ;;  %v5150_v30 = vadd.f32 %v5098_v6, %v690_v26 }
  0xd4   :  { %3990 = vmatmul.mubr.msk.f32.gmra.mxu0 %vm884_vm2, %v5134_v22  ;;  %v3801_v31 = vpop.f32.mrf.mxu0  ;;  %v5184_v48 = vpop.f32.mrf.mxu1 }
  0xd5   :  { %v5155_v33 = vadd.f32 %v5098_v6, %v689_v29  ;;  %v692_v34 = vmul.f32 %v3801_v31, %v5084_v0 }
  0xd6   :  { %v397_v35 = vpop.f32.mrf.mxu0  ;;  %v5190_v52 = vpop.f32.mrf.mxu1 }
  0xd7   :  { %3992 = vmatprep.mubr.msk.f32.mxu0 %vm884_vm2, %v5155_v33  ;;  %v691_v37 = vmul.f32 %v5084_v0, %v397_v35  ;;  %v5166_v38 = vadd.f32 %v5098_v6, %v692_v34 }
  0xd8   :  { %3993 = vmatmul.mubr.msk.f32.gmra.mxu0 %vm884_vm2, %v5150_v30  ;;  %v3804_v39 = vpop.f32.mrf.mxu0  ;;  %v5204_v59 = vpop.f32.mrf.mxu1 }
  0xd9   :  { %v5171_v41 = vadd.f32 %v5098_v6, %v691_v37  ;;  %v694_v42 = vmul.f32 %v3804_v39, %v5084_v0 }
  0xda   :  { %v407_v43 = vpop.f32.mrf.mxu0  ;;  %v5218_v3 = vpop.f32.mrf.mxu1 }
  0xdb   :  { %3995 = vmatprep.mubr.msk.f32.mxu0 %vm884_vm2, %v5171_v41  ;;  %v693_v45 = vmul.f32 %v5084_v0, %v407_v43  ;;  %v5182_v46 = vadd.f32 %v5098_v6, %v694_v42 }
  0xdc   :  { %3996 = vmatmul.mubr.msk.f32.gmra.mxu0 %vm884_vm2, %v5166_v38  ;;  %v3807_v47 = vpop.f32.mrf.mxu0  ;;  %v5232_v13 = vpop.f32.mrf.mxu1 }
  0xdd   :  { %v5187_v49 = vadd.f32 %v5098_v6, %v693_v45  ;;  %v696_v50 = vmul.f32 %v3807_v47, %v5084_v0 }
  0xde   :  { %v417_v51 = vpop.f32.mrf.mxu0  ;;  %v5246_v26 = vpop.f32.mrf.mxu1 }
  0xdf   :  { %3998 = vmatprep.mubr.msk.f32.mxu0 %vm884_vm2, %v5187_v49  ;;  %v695_v53 = vmul.f32 %v5084_v0, %v417_v51  ;;  %v5198_v54 = vadd.f32 %v5098_v6, %v696_v50 }
  0xe0   :  { %3999 = vmatmul.mubr.msk.f32.gmra.mxu0 %vm884_vm2, %v5182_v46  ;;  %v3810_v55 = vpop.f32.mrf.mxu0  ;;  %v5260_v39 = vpop.f32.mrf.mxu1 }
  0xe1   :  { %v5201_v56 = vadd.f32 %v5098_v6, %v695_v53  ;;  %v698_v57 = vmul.f32 %v3810_v55, %v5084_v0 }
  0xe2   :  { %v427_v58 = vpop.f32.mrf.mxu0  ;;  %v5274_v53 = vpop.f32.mrf.mxu1 }
  0xe3   :  { %4001 = vmatprep.mubr.msk.f32.mxu0 %vm884_vm2, %v5201_v56  ;;  %v697_v60 = vmul.f32 %v5084_v0, %v427_v58  ;;  %v5212_v61 = vadd.f32 %v5098_v6, %v698_v57 }
  0xe4   :  { %4002 = vmatmul.mubr.msk.f32.gmra.mxu0 %vm884_vm2, %v5198_v54  ;;  %v3813_v62 = vpop.f32.mrf.mxu0 }
  0xe5   :  { %v5215_v63 = vadd.f32 %v5098_v6, %v697_v60  ;;  %v700_v1 = vmul.f32 %v3813_v62, %v5084_v0 }
  0xe6   :  { %v437_v2 = vpop.f32.mrf.mxu0 }
  0xe7   :  { %4004 = vmatprep.mubr.msk.f32.mxu0 %vm884_vm2, %v5215_v63  ;;  %v699_v4 = vmul.f32 %v5084_v0, %v437_v2  ;;  %v5226_v5 = vadd.f32 %v5098_v6, %v700_v1  ;;  %v5288_v2 = vpop.f32.mrf.mxu1 }
  0xe8   :  { %4005 = vmatmul.mubr.msk.f32.gmra.mxu0 %vm884_vm2, %v5212_v61  ;;  %v3816_v7 = vpop.f32.mrf.mxu0 }
  0xe9   :  { %v5229_v8 = vadd.f32 %v5098_v6, %v699_v4  ;;  %v702_v10 = vmul.f32 %v3816_v7, %v5084_v0 }
  0xea   :  { %v447_v12 = vpop.f32.mrf.mxu0 }
  0xeb   :  { %4007 = vmatprep.mubr.msk.f32.mxu0 %vm884_vm2, %v5229_v8  ;;  %v701_v14 = vmul.f32 %v5084_v0, %v447_v12  ;;  %v5240_v15 = vadd.f32 %v5098_v6, %v702_v10 }
  0xec   :  { %4008 = vmatmul.mubr.msk.f32.gmra.mxu0 %vm884_vm2, %v5226_v5  ;;  %v3819_v17 = vpop.f32.mrf.mxu0 }
  0xed   :  { %v5243_v19 = vadd.f32 %v5098_v6, %v701_v14  ;;  %v704_v21 = vmul.f32 %v3819_v17, %v5084_v0 }
  0xee   :  { %v457_v23 = vpop.f32.mrf.mxu0 }
  0xef   :  { %4010 = vmatprep.mubr.msk.f32.mxu0 %vm884_vm2, %v5243_v19  ;;  %v703_v27 = vmul.f32 %v5084_v0, %v457_v23  ;;  %v5254_v29 = vadd.f32 %v5098_v6, %v704_v21  ;;  %v5302_v21 = vpop.f32.mrf.mxu1 }
  0xf0   :  { %4011 = vmatmul.mubr.msk.f32.gmra.mxu0 %vm884_vm2, %v5240_v15  ;;  %v3822_v31 = vpop.f32.mrf.mxu0 }
  0xf1   :  { %v5257_v34 = vadd.f32 %v5098_v6, %v703_v27  ;;  %v706_v35 = vmul.f32 %v3822_v31, %v5084_v0 }
  0xf2   :  { %v467_v37 = vpop.f32.mrf.mxu0 }
  0xf3   :  { %4013 = vmatprep.mubr.msk.f32.mxu0 %vm884_vm2, %v5257_v34  ;;  %v705_v42 = vmul.f32 %v5084_v0, %v467_v37  ;;  %v5268_v43 = vadd.f32 %v5098_v6, %v706_v35 }
  0xf4   :  { %4014 = vmatmul.mubr.msk.f32.gmra.mxu0 %vm884_vm2, %v5254_v29  ;;  %v3825_v45 = vpop.f32.mrf.mxu0 }
  0xf5   :  { %v5271_v47 = vadd.f32 %v5098_v6, %v705_v42  ;;  %v708_v50 = vmul.f32 %v3825_v45, %v5084_v0  ;;  %v715_v42 = vmul.f32 %v5084_v0, %v5136_v24 }
  0xf6   :  { %v477_v51 = vpop.f32.mrf.mxu0 }
  0xf7   :  { %4016 = vmatprep.mubr.msk.f32.mxu0 %vm884_vm2, %v5271_v47  ;;  %v707_v55 = vmul.f32 %v5084_v0, %v477_v51  ;;  %v5282_v57 = vadd.f32 %v5098_v6, %v708_v50  ;;  %v597_v50 = vpop.f32.mrf.mxu1  ;;  %v5332_v24 = vadd.f32 %v5098_v6, %v715_v42 }
  0xf8   :  { %4017 = vmatmul.mubr.msk.f32.gmra.mxu0 %vm884_vm2, %v5268_v43  ;;  %v3828_v58 = vpop.f32.mrf.mxu0 }
  0xf9   :  { %v5285_v60 = vadd.f32 %v5098_v6, %v707_v55  ;;  %v710_v62 = vmul.f32 %v3828_v58, %v5084_v0  ;;  %v716_v58 = vmul.f32 %v5126_v20, %v5084_v0  ;;  %v718_v20 = vmul.f32 %v5142_v28, %v5084_v0 }
  0xfa   :  { %v487_v1 = vpop.f32.mrf.mxu0 }
  0xfb   :  { %v709_v4 = vmul.f32 %v5084_v0, %v487_v1  ;;  %4019 = vmatprep.mubr.msk.f32.mxu0 %vm884_vm2, %v5285_v60  ;;  %v5294_v7 = vadd.f32 %v5098_v6, %v710_v62  ;;  %v717_v1 = vmul.f32 %v5084_v0, %v5152_v32  ;;  %v719_v32 = vmul.f32 %v5084_v0, %v5168_v40 }
  0xfc   :  { %4020 = vmatmul.mubr.msk.f32.gmra.mxu0 %vm884_vm2, %v5282_v57  ;;  %v3831_v10 = vpop.f32.mrf.mxu0 }
  0xfd   :  { %v5299_v12 = vadd.f32 %v5098_v6, %v709_v4  ;;  %v712_v14 = vmul.f32 %v3831_v10, %v5084_v0  ;;  %v3864_v4 = vpop.f32.mrf.mxu1  ;;  %v5339_v10 = vadd.f32 %v5098_v6, %v716_v58  ;;  %v5360_v28 = vadd.f32 %v5098_v6, %v719_v32 }
  0xfe   :  { %v497_v17 = vpop.f32.mrf.mxu0 }
  0xff   :  { %v711_v23 = vmul.f32 %v5084_v0, %v497_v17  ;;  %4022 = vmatprep.mubr.msk.f32.mxu0 %vm884_vm2, %v5299_v12  ;;  %v5308_v27 = vadd.f32 %v5098_v6, %v712_v14  ;;  %v5346_v14 = vadd.f32 %v5098_v6, %v717_v1  ;;  %v607_v17 = vpop.f32.mrf.mxu1  ;;  %v724_v1 = vmul.f32 %v5190_v52, %v5084_v0 }
 0x100   :  { %v3834_v31 = vpop.f32.mrf.mxu0  ;;  %4023 = vmatmul.mubr.msk.f32.gmra.mxu0 %vm884_vm2, %v5294_v7 }
 0x101   :  { %v5313_v35 = vadd.f32 %v5098_v6, %v711_v23  ;;  %v714_v37 = vmul.f32 %v3834_v31, %v5084_v0  ;;  %v5353_v23 = vadd.f32 %v5098_v6, %v718_v20  ;;  %v720_v31 = vmul.f32 %v5158_v36, %v5084_v0  ;;  %v3867_v40 = vpop.f32.mrf.mxu1 }
 0x102   :  { %v507_v45 = vpop.f32.mrf.mxu0  ;;  %v725_v20 = vmul.f32 %v5084_v0, %v5232_v13  ;;  %v5395_v32 = vadd.f32 %v5098_v6, %v724_v1  ;;  %v729_v1 = vmul.f32 %v5084_v0, %v5288_v2 }
 0x103   :  { %v713_v51 = vmul.f32 %v5084_v0, %v507_v45  ;;  %4025 = vmatprep.mubr.msk.f32.mxu0 %vm884_vm2, %v5313_v35  ;;  %v5322_v55 = vadd.f32 %v5098_v6, %v714_v37  ;;  %v721_v37 = vmul.f32 %v5084_v0, %v5184_v48  ;;  %v5367_v42 = vadd.f32 %v5098_v6, %v720_v31  ;;  %v617_v48 = vpop.f32.mrf.mxu1 }
 0x104   :  { %4026 = vmatmul.mubr.msk.f32.gmra.mxu0 %vm884_vm2, %v5308_v27  ;;  %v722_v45 = vmul.f32 %v5174_v44, %v5084_v0  ;;  %v726_v31 = vmul.f32 %v5218_v3, %v5084_v0  ;;  %v5402_v52 = vadd.f32 %v5098_v6, %v725_v20 }
 0x105   :  { %v5329_v62 = vadd.f32 %v5098_v6, %v713_v51  ;;  %v5374_v36 = vadd.f32 %v5098_v6, %v721_v37  ;;  %v723_v51 = vmul.f32 %v5084_v0, %v5204_v59  ;;  %v3870_v59 = vpop.f32.mrf.mxu1  ;;  %v727_v37 = vmul.f32 %v5084_v0, %v5260_v39 }
 0x106   :  { %v5381_v58 = vadd.f32 %v5098_v6, %v722_v45  ;;  %6286 = vst [vmem:[#allocation3_spill] sm:$0xff] %v5402_v52  ;;  %v5409_v45 = vadd.f32 %v5098_v6, %v726_v31  ;;  %v730_v31 = vmul.f32 %v5274_v53, %v5084_v0 }
 0x107   :  { %4028 = vmatprep.mubr.msk.f32.mxu0 %vm884_vm2, %v5329_v62  ;;  %v5388_v44 = vadd.f32 %v5098_v6, %v723_v51  ;;  %v627_v13 = vpop.f32.mrf.mxu1  ;;  %v728_v51 = vmul.f32 %v5246_v26, %v5084_v0  ;;  %v5416_v3 = vadd.f32 %v5098_v6, %v727_v37  ;;  %v5430_v26 = vadd.f32 %v5098_v6, %v729_v1 }
 0x108   :  { %4029 = vmatmul.mubr.msk.f32.gmra.mxu0 %vm884_vm2, %v5322_v55  ;;  %6287 = vst [vmem:[#allocation4_spill] sm:$0xff] %v5409_v45  ;;  %v731_v37 = vmul.f32 %v5084_v0, %v597_v50  ;;  %v5436_v2 = vadd.f32 %v5098_v6, %v730_v31  ;;  %v733_v1 = vmul.f32 %v5084_v0, %v607_v17 }
 0x109   :  { %4031 = vmatprep.mubr.msk.f32.mxu0 %vm884_vm2, %v5332_v24  ;;  %6285 = vst [vmem:[#allocation2_spill] sm:$0xff] %v5388_v44  ;;  %6288 = vst [vmem:[#allocation5_spill] sm:$0xff] %v5416_v3  ;;  %v3873_v39 = vpop.f32.mrf.mxu1  ;;  %v5423_v20 = vadd.f32 %v5098_v6, %v728_v51  ;;  %v732_v51 = vmul.f32 %v5302_v21, %v5084_v0  ;;  %v734_v31 = vmul.f32 %v3864_v4, %v5084_v0 }
 0x10a   :  { %6290 = vst [vmem:[#allocation7_spill] sm:$0xff] %v5430_v26  ;;  %6291 = vst [vmem:[#allocation8_spill] sm:$0xff] %v5436_v2  ;;  %v5443_v53 = vadd.f32 %v5098_v6, %v731_v37  ;;  %v5455_v21 = vadd.f32 %v5098_v6, %v733_v1  ;;  %v735_v37 = vmul.f32 %v5084_v0, %v617_v48 }
 0x10b   :  { %6289 = vst [vmem:[#allocation6_spill] sm:$0xff] %v5423_v20  ;;  %v5449_v50 = vadd.f32 %v5098_v6, %v732_v51  ;;  %v5461_v17 = vadd.f32 %v5098_v6, %v734_v31  ;;  %v736_v51 = vmul.f32 %v3867_v40, %v5084_v0  ;;  %v737_v1 = vmul.f32 %v5084_v0, %v627_v13 }
 0x10c   :  { %4032 = vmatmul.mubr.msk.f32.gmra.mxu0 %vm884_vm2, %v5339_v10  ;;  %6292 = vst [vmem:[#allocation9_spill] sm:$0xff] %v5443_v53  ;;  %6294 = vst [vmem:[#allocation11_spill] sm:$0xff] %v5455_v21  ;;  %v5467_v4 = vadd.f32 %v5098_v6, %v735_v37  ;;  %v738_v31 = vmul.f32 %v3870_v59, %v5084_v0  ;;  %v6264_v40 = vmov 1  }
 0x10d   :  { %4034 = vmatprep.mubr.msk.f32.mxu0 %vm884_vm2, %v5346_v14  ;;  %6293 = vst [vmem:[#allocation10_spill] sm:$0xff] %v5449_v50  ;;  %6295 = vst [vmem:[#allocation12_spill] sm:$0xff] %v5461_v17  ;;  %v5473_v48 = vadd.f32 %v5098_v6, %v736_v51  ;;  %4084 = vset.pattern.permute.xlu1 %v6264_v40  ;;  %v5480_v37 = vadd.f32 %v5098_v6, %v737_v1 }
 0x10e   :  { %6296 = vst [vmem:[#allocation13_spill] sm:$0xff] %v5467_v4  ;;  %v5487_v59 = vadd.f32 %v5098_v6, %v738_v31 }
 0x10f   :  { %6297 = vst [vmem:[#allocation14_spill] sm:$0xff] %v5473_v48  ;;  %6298 = vst [vmem:[#allocation15_spill] sm:$0xff] %v5480_v37 }
 0x110   :  { %4035 = vmatmul.mubr.msk.f32.gmra.mxu0 %vm884_vm2, %v5353_v23  ;;  %6299 = vst [vmem:[#allocation16_spill] sm:$0xff] %v5487_v59 }
 0x111   :  { %4037 = vmatprep.mubr.msk.f32.mxu0 %vm884_vm2, %v5360_v28 }
 0x114   :  { %4038 = vmatmul.mubr.msk.f32.gmra.mxu0 %vm884_vm2, %v5367_v42 }
 0x115   :  { %4040 = vmatprep.mubr.msk.f32.mxu0 %vm884_vm2, %v5374_v36 }
 0x118   :  { %4041 = vmatmul.mubr.msk.f32.gmra.mxu0 %vm884_vm2, %v5381_v58 }
 0x119   :  { %4043 = vmatprep.mubr.msk.f32.mxu0 %vm884_vm2, %v5388_v44 }
 0x11c   :  { %4044 = vmatmul.mubr.msk.f32.gmra.mxu0 %vm884_vm2, %v5395_v32 }
 0x11d   :  { %4046 = vmatprep.mubr.msk.f32.mxu0 %vm884_vm2, %v5402_v52  ;;  %v637_v52 = vpop.f32.mrf.mxu1 }
 0x11e   :  { %v739_v13 = vmul.f32 %v5084_v0, %v637_v52 }
 0x120   :  { %4047 = vmatmul.mubr.msk.f32.gmra.mxu0 %vm884_vm2, %v5409_v45  ;;  %v5493_v1 = vadd.f32 %v5098_v6, %v739_v13 }
 0x121   :  { %4049 = vmatprep.mubr.msk.f32.mxu0 %vm884_vm2, %v5416_v3  ;;  %v3876_v3 = vpop.f32.mrf.mxu1 }
 0x122   :  { %6300 = vst [vmem:[#allocation17_spill] sm:$0xff] %v5493_v1  ;;  %v742_v31 = vmul.f32 %v3876_v3, %v5084_v0 }
 0x124   :  { %4050 = vmatmul.mubr.msk.f32.gmra.mxu0 %vm884_vm2, %v5423_v20 }
 0x125   :  { %4052 = vmatprep.mubr.msk.f32.mxu0 %vm884_vm2, %v5430_v26  ;;  %v647_v26 = vpop.f32.mrf.mxu1 }
 0x126   :  { %v741_v52 = vmul.f32 %v5084_v0, %v647_v26  ;;  %v5511_v26 = vadd.f32 %v5098_v6, %v742_v31 }
 0x128   :  { %4053 = vmatmul.mubr.msk.f32.gmra.mxu0 %vm884_vm2, %v5436_v2  ;;  %6303 = vst [vmem:[#allocation20_spill] sm:$0xff] %v5511_v26 }
 0x129   :  { %4055 = vmatprep.mubr.msk.f32.mxu0 %vm884_vm2, %v5443_v53  ;;  %v3879_v53 = vpop.f32.mrf.mxu1 }
 0x12b   :  { %v657_v51 = vpop.f32.mrf.mxu1 }
 0x12c   :  { %4056 = vmatmul.mubr.msk.f32.gmra.mxu0 %vm884_vm2, %v5449_v50  ;;  %v743_v13 = vmul.f32 %v5084_v0, %v657_v51 }
 0x12d   :  { %4058 = vmatprep.mubr.msk.f32.mxu0 %vm884_vm2, %v5455_v21  ;;  %v6266_v21 = vmov 0   ;;  %v3882_v40 = vpop.f32.mrf.mxu1 }
 0x12e   :  { %4083 = vset.pattern.permute.xlu0 %v6266_v21  ;;  %v5517_v3 = vadd.f32 %v5098_v6, %v743_v13  ;;  %v746_v51 = vmul.f32 %v3882_v40, %v5084_v0  ;;  %v5545_v13 = vld [vmem:[%s6256_s7] ss:$0 sm:$0xff] }
 0x130   :  { %4059 = vmatmul.mubr.msk.f32.gmra.mxu0 %vm884_vm2, %v5461_v17  ;;  %v740_v17 = vmul.f32 %v3873_v39, %v5084_v0  ;;  %v5505_v39 = vadd.f32 %v5098_v6, %v741_v52  ;;  %6304 = vst [vmem:[#allocation21_spill] sm:$0xff] %v5517_v3  ;;  %v5534_v31 = vadd.f32 %v5098_v6, %v746_v51 }
 0x131   :  { %4061 = vmatprep.mubr.msk.f32.mxu0 %vm884_vm2, %v5467_v4 }
 0x132   :  { %v5499_v21 = vadd.f32 %v5098_v6, %v740_v17  ;;  %6302 = vst [vmem:[#allocation19_spill] sm:$0xff] %v5505_v39  ;;  %v744_v17 = vmul.f32 %v3879_v53, %v5084_v0  ;;  %6307 = vst [vmem:[#allocation24_spill] sm:$0xff] %v5534_v31 }
 0x134   :  { %4062 = vmatmul.mubr.msk.f32.gmra.mxu0 %vm884_vm2, %v5473_v48  ;;  %6301 = vst [vmem:[#allocation18_spill] sm:$0xff] %v5499_v21 }
 0x135   :  { %4064 = vmatprep.mubr.msk.f32.mxu0 %vm884_vm2, %v5480_v37  ;;  %v667_v37 = vpop.f32.mrf.mxu1 }
 0x136   :  { %v745_v52 = vmul.f32 %v5084_v0, %v667_v37 }
 0x137   :  { %v3887_v0 = vpop.f32.mrf.mxu1 }
 0x138   :  { %4065 = vmatmul.mubr.msk.f32.gmra.mxu0 %vm884_vm2, %v5487_v59  ;;  %v5529_v53 = vadd.f32 %v5098_v6, %v745_v52 }
 0x139   :  { %4067 = vmatprep.mubr.msk.f32.mxu0 %vm884_vm2, %v5493_v1  ;;  %v5523_v1 = vadd.f32 %v5098_v6, %v744_v17  ;;  %v1143_v40 = vpop.f32.mrf.mxu1 }
 0x13a   :  { %6306 = vst [vmem:[#allocation23_spill] sm:$0xff] %v5529_v53 }
 0x13b   :  { %6305 = vst [vmem:[#allocation22_spill] sm:$0xff] %v5523_v1  ;;  %v3890_v17 = vpop.f32.mrf.mxu1 }
 0x13c   :  { %4068 = vmatmul.mubr.msk.f32.gmra.mxu0 %vm884_vm2, %v5499_v21 }
 0x13d   :  { %4070 = vmatprep.mubr.msk.f32.mxu0 %vm884_vm2, %v5505_v39  ;;  %v1153_v39 = vpop.f32.mrf.mxu1 }
 0x13f   :  { %v3893_v59 = vpop.f32.mrf.mxu1 }
 0x140   :  { %4071 = vmatmul.mubr.msk.f32.gmra.mxu0 %vm884_vm2, %v5511_v26 }
 0x141   :  { %4073 = vmatprep.mubr.msk.f32.mxu0 %vm884_vm2, %v5517_v3 }
 0x144   :  { %4074 = vmatmul.mubr.msk.f32.gmra.mxu0 %vm884_vm2, %v5523_v1 }
 0x145   :  { %4076 = vmatprep.mubr.msk.f32.mxu0 %vm884_vm2, %v5529_v53 }
 0x148   :  { %4077 = vmatmul.mubr.msk.f32.gmra.mxu0 %vm884_vm2, %v5534_v31 }
 0x18c   :  { %v3985_v37 = vpop.f32.mrf.mxu0 }
 0x18d   :  { %v1726_v6 = vadd.f32 %v3985_v37, %v3887_v0 }
 0x18e   :  { %v1720_v52 = vpop.f32.mrf.mxu0 }
 0x18f   :  { %v2047_v51 = vadd.f32 %v5545_v13, %v1726_v6  ;;  %v1721_v3 = vadd.f32 %v1720_v52, %v1143_v40  ;;  %v1163_v40 = vpop.f32.mrf.mxu1 }
 0x190   :  { %v3988_v1 = vpop.f32.mrf.mxu0 }
 0x191   :  { %v3527_v53 = vmul.f32 -1.442695, %v2047_v51  ;;  %v2046_v26 = vadd.f32 %v5545_v13, %v1721_v3  ;;  %v1736_v31 = vadd.f32 %v3988_v1, %v3890_v17 }
 0x192   :  { %v1730_v21 = vpop.f32.mrf.mxu0 }
 0x193   :  { %4206 = vpow2.f32 %v3527_v53  ;;  %v3526_v4 = vmul.f32 -1.442695, %v2046_v26  ;;  %v2049_v48 = vadd.f32 %v5545_v13, %v1736_v31  ;;  %v1731_v50 = vadd.f32 %v1730_v21, %v1153_v39  ;;  %v3896_v53 = vpop.f32.mrf.mxu1 }
 0x194   :  { %v3991_v2 = vpop.f32.mrf.mxu0 }
 0x195   :  { %4208 = vpow2.f32 %v3526_v4  ;;  %v3529_v0 = vmul.f32 -1.442695, %v2049_v48  ;;  %v2048_v37 = vadd.f32 %v5545_v13, %v1731_v50  ;;  %v1746_v6 = vadd.f32 %v3991_v2, %v3893_v59  ;;  %v1173_v50 = vpop.f32.mrf.mxu1 }
 0x196   :  { %v1740_v52 = vpop.f32.mrf.mxu0 }
 0x197   :  { %4210 = vpow2.f32 %v3529_v0  ;;  %v3528_v51 = vmul.f32 -1.442695, %v2048_v37  ;;  %v2051_v3 = vadd.f32 %v5545_v13, %v1746_v6  ;;  %v1741_v1 = vadd.f32 %v1740_v52, %v1163_v40  ;;  %v3899_v52 = vpop.f32.mrf.mxu1 }
 0x198   :  { %v3994_v26 = vpop.f32.mrf.mxu0 }
 0x199   :  { %4212 = vpow2.f32 %v3528_v51  ;;  %v3531_v17 = vmul.f32 -1.442695, %v2051_v3  ;;  %v1756_v20 = vadd.f32 %v3994_v26, %v3896_v53  ;;  %v2050_v21 = vadd.f32 %v5545_v13, %v1741_v1 }
 0x19a   :  { %v1750_v2 = vpop.f32.mrf.mxu0 }
 0x19b   :  { %4214 = vpow2.f32 %v3531_v17  ;;  %v2053_v48 = vadd.f32 %v5545_v13, %v1756_v20  ;;  %v3530_v39 = vmul.f32 -1.442695, %v2050_v21  ;;  %v1751_v37 = vadd.f32 %v1750_v2, %v1173_v50  ;;  %v1183_v21 = vpop.f32.mrf.mxu1 }
 0x19c   :  { %v3997_v51 = vpop.f32.mrf.mxu0 }
 0x19d   :  { %v3533_v40 = vmul.f32 -1.442695, %v2053_v48  ;;  %v1766_v53 = vadd.f32 %v3997_v51, %v3899_v52  ;;  %v2052_v20 = vadd.f32 %v5545_v13, %v1751_v37 }
 0x19f   :  { %v2055_v26 = vadd.f32 %v5545_v13, %v1766_v53  ;;  %v3532_v50 = vmul.f32 -1.442695, %v2052_v20 }
 0x1a0   :  { %v4207_v4 = vpop.eup %4206 }
 0x1a1   :  { %v2303_v59 = vadd.f32 1.0, %v4207_v4  ;;  %v1760_v4 = vpop.f32.mrf.mxu0  ;;  %v3535_v2 = vmul.f32 -1.442695, %v2055_v26 }
 0x1a2   :  { %v4209_v31 = vpop.eup %4208  ;;  %v1761_v48 = vadd.f32 %v1760_v4, %v1183_v21  ;;  %v6308_v4 = vmov 0  }
 0x1a3   :  { %4216 = vrcp.f32 %v2303_v59  ;;  %v2302_v0 = vadd.f32 1.0, %v4209_v31 }
 0x1a4   :  { %v4211_v6 = vpop.eup %4210  ;;  %4218 = vpow2.f32 %v3530_v39  ;;  %v4000_v39 = vpop.f32.mrf.mxu0  ;;  %v2054_v51 = vadd.f32 %v5545_v13, %v1761_v48 }
 0x1a5   :  { %v2305_v3 = vadd.f32 1.0, %v4211_v6  ;;  %4220 = vrcp.f32 %v2302_v0  ;;  %v3902_v6 = vpop.f32.mrf.mxu1 }
 0x1a6   :  { %v4213_v1 = vpop.eup %4212  ;;  %v1776_v52 = vadd.f32 %v4000_v39, %v3902_v6  ;;  %v6309_v39 = vmov 1  }
 0x1a7   :  { %4222 = vrcp.f32 %v2305_v3  ;;  %v2304_v17 = vadd.f32 1.0, %v4213_v1  ;;  %v1193_v53 = vpop.f32.mrf.mxu1  ;;  %v1770_v1 = vpop.f32.mrf.mxu0 }
 0x1a8   :  { %4224 = vpow2.f32 %v3533_v40  ;;  %v4215_v59 = vpop.eup %4214  ;;  %v2057_v3 = vadd.f32 %v5545_v13, %v1776_v52 }
 0x1a9   :  { %4226 = vrcp.f32 %v2304_v17  ;;  %v2307_v31 = vadd.f32 1.0, %v4215_v59  ;;  %v3534_v17 = vmul.f32 -1.442695, %v2054_v51  ;;  %v1771_v59 = vadd.f32 %v1770_v1, %v1193_v53  ;;  %v4003_v6 = vpop.f32.mrf.mxu0 }
 0x1aa   :  { %4228 = vpow2.f32 %v3532_v50  ;;  %v3537_v50 = vmul.f32 -1.442695, %v2057_v3 }
 0x1ab   :  { %4230 = vpow2.f32 %v3535_v2  ;;  %v3905_v2 = vpop.f32.mrf.mxu1  ;;  %v1780_v3 = vpop.f32.mrf.mxu0 }
 0x1ac   :  { %4232 = vrcp.f32 %v2307_v31  ;;  %v1786_v52 = vadd.f32 %v4003_v6, %v3905_v2 }
 0x1ad   :  { %4234 = vpow2.f32 %v3534_v17  ;;  %v1203_v53 = vpop.f32.mrf.mxu1 }
 0x1ae   :  { %v1781_v2 = vadd.f32 %v1780_v3, %v1203_v53 }
 0x1b0   :  { %v4217_v0 = vpop.eup %4216 }
 0x1b1   :  { %2883 = vperm.xlu1 %4084, %v4217_v0   ;;  %2501 = vperm.xlu0 %4083, %v4217_v0   ;;  %v4219_v37 = vpop.eup %4218  ;;  %v2056_v0 = vadd.f32 %v5545_v13, %v1771_v59 }
 0x1b2   :  { %v4221_v40 = vpop.eup %4220  ;;  %v2306_v21 = vadd.f32 1.0, %v4219_v37  ;;  %v2059_v37 = vadd.f32 %v5545_v13, %v1786_v52  ;;  %v2058_v52 = vadd.f32 %v5545_v13, %v1781_v2 }
 0x1b3   :  { %v3536_v17 = vmul.f32 -1.442695, %v2056_v0 }
 0x1b4   :  { %v4223_v20 = vpop.eup %4222  ;;  %4236 = vrcp.f32 %v2306_v21  ;;  %v3539_v6 = vmul.f32 -1.442695, %v2059_v37  ;;  %v3538_v3 = vmul.f32 -1.442695, %v2058_v52 }
 0x1b5   :  { %v4225_v26 = vpop.eup %4224  ;;  %4086 = vset.pattern.permute.xlu1 %v6308_v4  ;;  %2496 = vperm.xlu0 %4083, %v4221_v40   ;;  %4238 = vpow2.f32 %v3537_v50  ;;  %v4006_v50 = vpop.f32.mrf.mxu0 }
 0x1b6   :  { %2511 = vperm.xlu1 %4086, %v4223_v20   ;;  %v2309_v48 = vadd.f32 1.0, %v4225_v26  ;;  %v4227_v31 = vpop.eup %4226 }
 0x1b7   :  { %v4229_v51 = vpop.eup %4228  ;;  %v1790_v37 = vpop.f32.mrf.mxu0 }
 0x1b8   :  { %4240 = vrcp.f32 %v2309_v48  ;;  %v4231_v1 = vpop.eup %4230  ;;  %v2308_v21 = vadd.f32 1.0, %v4229_v51 }
 0x1b9   :  { %4085 = vset.pattern.permute.xlu0 %v6309_v39  ;;  %v4233_v26 = vpop.eup %4232  ;;  %v2311_v59 = vadd.f32 1.0, %v4231_v1  ;;  %4242 = vpow2.f32 %v3536_v17 }
 0x1ba   :  { %2506 = vperm.xlu1 %4086, %v4227_v31   ;;  %2879 = vperm.xlu0 %4085, %v4221_v40   ;;  %v3908_v40 = vpop.f32.mrf.mxu1  ;;  %4244 = vrcp.f32 %v2308_v21  ;;  %v4235_v0 = vpop.eup %4234 }
 0x1bb   :  { %v1796_v48 = vadd.f32 %v4006_v50, %v3908_v40  ;;  %4246 = vpow2.f32 %v3539_v6  ;;  %v2310_v17 = vadd.f32 1.0, %v4235_v0 }
 0x1bc   :  { %4248 = vrcp.f32 %v2311_v59  ;;  %v1213_v51 = vpop.f32.mrf.mxu1  ;;  %v4009_v59 = vpop.f32.mrf.mxu0 }
 0x1bd   :  { %v1791_v21 = vadd.f32 %v1790_v37, %v1213_v51  ;;  %4250 = vpow2.f32 %v3538_v3 }
 0x1be   :  { %4087 = vset.pattern.permute.xlu1 %v6309_v39  ;;  %2891 = vperm.xlu0 %4085, %v4223_v20   ;;  %v3911_v6 = vpop.f32.mrf.mxu1  ;;  %4252 = vrcp.f32 %v2310_v17 }
 0x1bf   :  { %2887 = vperm.xlu1 %4087, %v4227_v31   ;;  %v2061_v31 = vadd.f32 %v5545_v13, %v1796_v48  ;;  %v1806_v40 = vadd.f32 %v4009_v59, %v3911_v6  ;;  %v2060_v50 = vadd.f32 %v5545_v13, %v1791_v21 }
 0x1c1   :  { %v4237_v20 = vpop.eup %4236  ;;  %v2063_v0 = vadd.f32 %v5545_v13, %v1806_v40  ;;  %v3540_v37 = vmul.f32 -1.442695, %v2060_v50 }
 0x1c2   :  { %2899 = vperm.xlu0 %4085, %v4233_v26   ;;  %v4239_v53 = vpop.eup %4238 }
 0x1c3   :  { %4088 = vset.pattern.permute.xlu1 %v6308_v4  ;;  %v2313_v2 = vadd.f32 1.0, %v4239_v53 }
 0x1c4   :  { %2521 = vperm.xlu1 %4088, %v4233_v26   ;;  %v3541_v26 = vmul.f32 -1.442695, %v2061_v31  ;;  %v1800_v31 = vpop.f32.mrf.mxu0 }
 0x1c5   :  { %v4241_v1 = vpop.eup %4240 }
 0x1c6   :  { %4089 = vset.pattern.permute.xlu0 %v6308_v4  ;;  %v4243_v48 = vpop.eup %4242  ;;  %4254 = vpow2.f32 %v3541_v26 }
 0x1c7   :  { %2516 = vperm.xlu0 %4089, %v4237_v20   ;;  %v4245_v52 = vpop.eup %4244  ;;  %4256 = vrcp.f32 %v2313_v2  ;;  %v2312_v3 = vadd.f32 1.0, %v4243_v48  ;;  %v4012_v2 = vpop.f32.mrf.mxu0 }
 0x1c8   :  { %4090 = vset.pattern.permute.xlu1 %v6309_v39  ;;  %v4247_v51 = vpop.eup %4246  ;;  %4258 = vpow2.f32 %v3540_v37 }
 0x1c9   :  { %2895 = vperm.xlu1 %4090, %v4237_v20   ;;  %v1223_v20 = vpop.f32.mrf.mxu1  ;;  %v4249_v53 = vpop.eup %4248  ;;  %v2315_v21 = vadd.f32 1.0, %v4247_v51  ;;  %4260 = vrcp.f32 %v2312_v3 }
 0x1ca   :  { %v1801_v17 = vadd.f32 %v1800_v31, %v1223_v20  ;;  %v4251_v40 = vpop.eup %4250 }
 0x1cb   :  { %4092 = vset.pattern.permute.xlu0 %v6309_v39  ;;  %v3914_v26 = vpop.f32.mrf.mxu1  ;;  %v4253_v50 = vpop.eup %4252  ;;  %v2314_v37 = vadd.f32 1.0, %v4251_v40 }
 0x1cc   :  { %2907 = vperm.xlu0 %4092, %v4241_v1   ;;  %v1816_v6 = vadd.f32 %v4012_v2, %v3914_v26  ;;  %v2062_v59 = vadd.f32 %v5545_v13, %v1801_v17 }
 0x1cd   :  { %4091 = vset.pattern.permute.xlu1 %v6308_v4 }
 0x1ce   :  { %2531 = vperm.xlu1 %4091, %v4241_v1   ;;  %v3543_v1 = vmul.f32 -1.442695, %v2063_v0  ;;  %v2065_v48 = vadd.f32 %v5545_v13, %v1816_v6  ;;  %v1810_v0 = vpop.f32.mrf.mxu0  ;;  %v3542_v31 = vmul.f32 -1.442695, %v2062_v59 }
 0x1d0   :  { %4093 = vset.pattern.permute.xlu0 %v6308_v4  ;;  %4262 = vpow2.f32 %v3543_v1 }
 0x1d1   :  { %2526 = vperm.xlu0 %4093, %v4245_v52   ;;  %4264 = vrcp.f32 %v2315_v21  ;;  %v4015_v21 = vpop.f32.mrf.mxu0 }
 0x1d2   :  { %4094 = vset.pattern.permute.xlu1 %v6309_v39  ;;  %4266 = vpow2.f32 %v3542_v31 }
 0x1d3   :  { %2903 = vperm.xlu1 %4094, %v4245_v52   ;;  %v1233_v52 = vpop.f32.mrf.mxu1  ;;  %v4255_v20 = vpop.eup %4254  ;;  %4268 = vrcp.f32 %v2314_v37 }
 0x1d4   :  { %v4257_v51 = vpop.eup %4256  ;;  %v1811_v3 = vadd.f32 %v1810_v0, %v1233_v52  ;;  %v2317_v17 = vadd.f32 1.0, %v4255_v20 }
 0x1d5   :  { %4096 = vset.pattern.permute.xlu0 %v6309_v39  ;;  %v3917_v1 = vpop.f32.mrf.mxu1  ;;  %v4259_v6 = vpop.eup %4258 }
 0x1d6   :  { %2915 = vperm.xlu0 %4096, %v4249_v53   ;;  %v1826_v26 = vadd.f32 %v4015_v21, %v3917_v1  ;;  %v2064_v2 = vadd.f32 %v5545_v13, %v1811_v3  ;;  %v4261_v59 = vpop.eup %4260  ;;  %v2316_v31 = vadd.f32 1.0, %v4259_v6 }
 0x1d7   :  { %4095 = vset.pattern.permute.xlu1 %v6308_v4 }
 0x1d8   :  { %2541 = vperm.xlu1 %4095, %v4249_v53   ;;  %v3545_v53 = vmul.f32 -1.442695, %v2065_v48  ;;  %v2067_v40 = vadd.f32 %v5545_v13, %v1826_v26  ;;  %v1820_v48 = vpop.f32.mrf.mxu0  ;;  %v3544_v0 = vmul.f32 -1.442695, %v2064_v2 }
 0x1da   :  { %4097 = vset.pattern.permute.xlu0 %v6308_v4  ;;  %4270 = vpow2.f32 %v3545_v53 }
 0x1db   :  { %2536 = vperm.xlu0 %4097, %v4253_v50   ;;  %4272 = vrcp.f32 %v2317_v17  ;;  %v4018_v17 = vpop.f32.mrf.mxu0 }
 0x1dc   :  { %4098 = vset.pattern.permute.xlu1 %v6309_v39  ;;  %4274 = vpow2.f32 %v3544_v0 }
 0x1dd   :  { %2911 = vperm.xlu1 %4098, %v4253_v50   ;;  %v1243_v50 = vpop.f32.mrf.mxu1  ;;  %v4263_v52 = vpop.eup %4262  ;;  %4276 = vrcp.f32 %v2316_v31 }
 0x1de   :  { %v4265_v20 = vpop.eup %4264  ;;  %v1821_v37 = vadd.f32 %v1820_v48, %v1243_v50  ;;  %v2319_v3 = vadd.f32 1.0, %v4263_v52 }
 0x1df   :  { %4100 = vset.pattern.permute.xlu0 %v6309_v39  ;;  %v3920_v53 = vpop.f32.mrf.mxu1  ;;  %v4267_v26 = vpop.eup %4266 }
 0x1e0   :  { %2923 = vperm.xlu0 %4100, %v4257_v51   ;;  %v1836_v1 = vadd.f32 %v4018_v17, %v3920_v53  ;;  %v2066_v21 = vadd.f32 %v5545_v13, %v1821_v37  ;;  %v4269_v2 = vpop.eup %4268  ;;  %v2318_v0 = vadd.f32 1.0, %v4267_v26 }
 0x1e1   :  { %4099 = vset.pattern.permute.xlu1 %v6308_v4 }
 0x1e2   :  { %2551 = vperm.xlu1 %4099, %v4257_v51   ;;  %v3547_v51 = vmul.f32 -1.442695, %v2067_v40  ;;  %v2069_v6 = vadd.f32 %v5545_v13, %v1836_v1  ;;  %v1830_v40 = vpop.f32.mrf.mxu0  ;;  %v3546_v48 = vmul.f32 -1.442695, %v2066_v21 }
 0x1e4   :  { %4101 = vset.pattern.permute.xlu0 %v6308_v4  ;;  %4278 = vpow2.f32 %v3547_v51 }
 0x1e5   :  { %2546 = vperm.xlu0 %4101, %v4261_v59   ;;  %4280 = vrcp.f32 %v2319_v3  ;;  %v4021_v3 = vpop.f32.mrf.mxu0 }
 0x1e6   :  { %4102 = vset.pattern.permute.xlu1 %v6309_v39  ;;  %4282 = vpow2.f32 %v3546_v48 }
 0x1e7   :  { %2919 = vperm.xlu1 %4102, %v4261_v59   ;;  %v1253_v59 = vpop.f32.mrf.mxu1  ;;  %v4271_v50 = vpop.eup %4270  ;;  %4284 = vrcp.f32 %v2318_v0 }
 0x1e8   :  { %v4273_v52 = vpop.eup %4272  ;;  %v1831_v31 = vadd.f32 %v1830_v40, %v1253_v59  ;;  %v2321_v37 = vadd.f32 1.0, %v4271_v50 }
 0x1e9   :  { %4104 = vset.pattern.permute.xlu0 %v6309_v39  ;;  %v3923_v51 = vpop.f32.mrf.mxu1  ;;  %v4275_v1 = vpop.eup %4274 }
 0x1ea   :  { %2931 = vperm.xlu0 %4104, %v4265_v20   ;;  %v1846_v53 = vadd.f32 %v4021_v3, %v3923_v51  ;;  %v2068_v17 = vadd.f32 %v5545_v13, %v1831_v31  ;;  %v4277_v21 = vpop.eup %4276  ;;  %v2320_v48 = vadd.f32 1.0, %v4275_v1 }
 0x1eb   :  { %4103 = vset.pattern.permute.xlu1 %v6308_v4 }
 0x1ec   :  { %2561 = vperm.xlu1 %4103, %v4265_v20   ;;  %v3549_v20 = vmul.f32 -1.442695, %v2069_v6  ;;  %v2071_v26 = vadd.f32 %v5545_v13, %v1846_v53  ;;  %v1840_v6 = vpop.f32.mrf.mxu0  ;;  %v3548_v40 = vmul.f32 -1.442695, %v2068_v17 }
 0x1ee   :  { %4105 = vset.pattern.permute.xlu0 %v6308_v4  ;;  %4286 = vpow2.f32 %v3549_v20 }
 0x1ef   :  { %2556 = vperm.xlu0 %4105, %v4269_v2   ;;  %4288 = vrcp.f32 %v2321_v37  ;;  %v4024_v37 = vpop.f32.mrf.mxu0 }
 0x1f0   :  { %4106 = vset.pattern.permute.xlu1 %v6309_v39  ;;  %4290 = vpow2.f32 %v3548_v40 }
 0x1f1   :  { %2927 = vperm.xlu1 %4106, %v4269_v2   ;;  %v1263_v2 = vpop.f32.mrf.mxu1  ;;  %v4279_v59 = vpop.eup %4278  ;;  %4292 = vrcp.f32 %v2320_v48 }
 0x1f2   :  { %v4281_v50 = vpop.eup %4280  ;;  %v1841_v0 = vadd.f32 %v1840_v6, %v1263_v2  ;;  %v2323_v31 = vadd.f32 1.0, %v4279_v59  ;;  %v1850_v6 = vpop.f32.mrf.mxu0 }
 0x1f3   :  { %4108 = vset.pattern.permute.xlu0 %v6309_v39  ;;  %v3926_v20 = vpop.f32.mrf.mxu1  ;;  %v4283_v53 = vpop.eup %4282 }
 0x1f4   :  { %2939 = vperm.xlu0 %4108, %v4273_v52   ;;  %v1856_v51 = vadd.f32 %v4024_v37, %v3926_v20  ;;  %v2070_v3 = vadd.f32 %v5545_v13, %v1841_v0  ;;  %v4285_v17 = vpop.eup %4284  ;;  %v2322_v40 = vadd.f32 1.0, %v4283_v53 }
 0x1f5   :  { %4107 = vset.pattern.permute.xlu1 %v6308_v4  ;;  %v1273_v2 = vpop.f32.mrf.mxu1 }
 0x1f6   :  { %2571 = vperm.xlu1 %4107, %v4273_v52   ;;  %v3551_v52 = vmul.f32 -1.442695, %v2071_v26  ;;  %v2073_v1 = vadd.f32 %v5545_v13, %v1856_v51  ;;  %v3550_v26 = vmul.f32 -1.442695, %v2070_v3  ;;  %v1851_v48 = vadd.f32 %v1850_v6, %v1273_v2 }
 0x1f8   :  { %4109 = vset.pattern.permute.xlu0 %v6308_v4  ;;  %4294 = vpow2.f32 %v3551_v52  ;;  %v3929_v52 = vpop.f32.mrf.mxu1  ;;  %v2072_v37 = vadd.f32 %v5545_v13, %v1851_v48 }
 0x1f9   :  { %2566 = vperm.xlu0 %4109, %v4277_v21   ;;  %4296 = vrcp.f32 %v2323_v31  ;;  %v4027_v31 = vpop.f32.mrf.mxu0 }
 0x1fa   :  { %4110 = vset.pattern.permute.xlu1 %v6309_v39  ;;  %4298 = vpow2.f32 %v3550_v26  ;;  %v1866_v20 = vadd.f32 %v4027_v31, %v3929_v52 }
 0x1fb   :  { %2935 = vperm.xlu1 %4110, %v4277_v21   ;;  %v4287_v21 = vpop.eup %4286  ;;  %4300 = vrcp.f32 %v2322_v40  ;;  %v1860_v26 = vpop.f32.mrf.mxu0 }
 0x1fc   :  { %v4289_v59 = vpop.eup %4288  ;;  %v2325_v0 = vadd.f32 1.0, %v4287_v21  ;;  %v2075_v53 = vadd.f32 %v5545_v13, %v1866_v20  ;;  %v1283_v21 = vpop.f32.mrf.mxu1 }
 0x1fd   :  { %4112 = vset.pattern.permute.xlu0 %v6309_v39  ;;  %v4291_v51 = vpop.eup %4290  ;;  %v1861_v40 = vadd.f32 %v1860_v26, %v1283_v21 }
 0x1fe   :  { %2947 = vperm.xlu0 %4112, %v4281_v50   ;;  %v4293_v3 = vpop.eup %4292  ;;  %v2324_v6 = vadd.f32 1.0, %v4291_v51 }
 0x1ff   :  { %4111 = vset.pattern.permute.xlu1 %v6308_v4  ;;  %v2074_v31 = vadd.f32 %v5545_v13, %v1861_v40 }
 0x200   :  { %2581 = vperm.xlu1 %4111, %v4281_v50   ;;  %v3553_v50 = vmul.f32 -1.442695, %v2073_v1  ;;  %v3552_v1 = vmul.f32 -1.442695, %v2072_v37 }
 0x202   :  { %4113 = vset.pattern.permute.xlu0 %v6308_v4  ;;  %4302 = vpow2.f32 %v3553_v50  ;;  %v3932_v50 = vpop.f32.mrf.mxu1 }
 0x203   :  { %2576 = vperm.xlu0 %4113, %v4285_v17   ;;  %4304 = vrcp.f32 %v2325_v0  ;;  %v4030_v0 = vpop.f32.mrf.mxu0 }
 0x204   :  { %4114 = vset.pattern.permute.xlu1 %v6309_v39  ;;  %4306 = vpow2.f32 %v3552_v1  ;;  %v1876_v52 = vadd.f32 %v4030_v0, %v3932_v50  ;;  %v1293_v21 = vpop.f32.mrf.mxu1 }
 0x205   :  { %2943 = vperm.xlu1 %4114, %v4285_v17   ;;  %v4295_v17 = vpop.eup %4294  ;;  %4308 = vrcp.f32 %v2324_v6  ;;  %v1870_v26 = vpop.f32.mrf.mxu0 }
 0x206   :  { %v4297_v2 = vpop.eup %4296  ;;  %v2327_v48 = vadd.f32 1.0, %v4295_v17  ;;  %v2077_v51 = vadd.f32 %v5545_v13, %v1876_v52  ;;  %v1871_v6 = vadd.f32 %v1870_v26, %v1293_v21 }
 0x207   :  { %4116 = vset.pattern.permute.xlu0 %v6309_v39  ;;  %v4299_v20 = vpop.eup %4298 }
 0x208   :  { %2955 = vperm.xlu0 %4116, %v4289_v59   ;;  %v4301_v37 = vpop.eup %4300  ;;  %v2326_v1 = vadd.f32 1.0, %v4299_v20  ;;  %v2076_v50 = vadd.f32 %v5545_v13, %v1871_v6 }
 0x209   :  { %4115 = vset.pattern.permute.xlu1 %v6308_v4 }
 0x20a   :  { %2591 = vperm.xlu1 %4115, %v4289_v59   ;;  %v3555_v59 = vmul.f32 -1.442695, %v2075_v53  ;;  %v3554_v53 = vmul.f32 -1.442695, %v2074_v31 }
 0x20c   :  { %4117 = vset.pattern.permute.xlu0 %v6308_v4  ;;  %4310 = vpow2.f32 %v3555_v59  ;;  %v3935_v59 = vpop.f32.mrf.mxu1 }
 0x20d   :  { %2586 = vperm.xlu0 %4117, %v4293_v3   ;;  %4312 = vrcp.f32 %v2327_v48  ;;  %v4033_v48 = vpop.f32.mrf.mxu0 }
 0x20e   :  { %4118 = vset.pattern.permute.xlu1 %v6309_v39  ;;  %4314 = vpow2.f32 %v3554_v53  ;;  %v1886_v31 = vadd.f32 %v4033_v48, %v3935_v59  ;;  %v1303_v20 = vpop.f32.mrf.mxu1 }
 0x20f   :  { %2951 = vperm.xlu1 %4118, %v4293_v3   ;;  %v4303_v3 = vpop.eup %4302  ;;  %4316 = vrcp.f32 %v2326_v1 }
 0x210   :  { %v4305_v17 = vpop.eup %4304  ;;  %v2329_v40 = vadd.f32 1.0, %v4303_v3  ;;  %v3556_v3 = vmul.f32 -1.442695, %v2076_v50  ;;  %v2079_v21 = vadd.f32 %v5545_v13, %v1886_v31  ;;  %v3938_v6 = vpop.f32.mrf.mxu1 }
 0x211   :  { %4120 = vset.pattern.permute.xlu0 %v6309_v39  ;;  %v4307_v0 = vpop.eup %4306 }
 0x212   :  { %2963 = vperm.xlu0 %4120, %v4297_v2   ;;  %v4309_v52 = vpop.eup %4308  ;;  %v2328_v1 = vadd.f32 1.0, %v4307_v0 }
 0x213   :  { %4119 = vset.pattern.permute.xlu1 %v6308_v4 }
 0x214   :  { %2601 = vperm.xlu1 %4119, %v4297_v2   ;;  %v3557_v2 = vmul.f32 -1.442695, %v2077_v51 }
 0x216   :  { %4121 = vset.pattern.permute.xlu0 %v6308_v4  ;;  %4318 = vpow2.f32 %v3557_v2 }
 0x217   :  { %2596 = vperm.xlu0 %4121, %v4301_v37   ;;  %4320 = vrcp.f32 %v2329_v40  ;;  %v3559_v40 = vmul.f32 -1.442695, %v2079_v21 }
 0x218   :  { %4122 = vset.pattern.permute.xlu1 %v6309_v39  ;;  %4322 = vpow2.f32 %v3556_v3 }
 0x219   :  { %2959 = vperm.xlu1 %4122, %v4301_v37   ;;  %v1880_v37 = vpop.f32.mrf.mxu0  ;;  %v4311_v51 = vpop.eup %4310  ;;  %4324 = vrcp.f32 %v2328_v1 }
 0x21a   :  { %v4313_v53 = vpop.eup %4312  ;;  %v2331_v26 = vadd.f32 1.0, %v4311_v51 }
 0x21b   :  { %4124 = vset.pattern.permute.xlu0 %v6309_v39  ;;  %v4036_v2 = vpop.f32.mrf.mxu0  ;;  %v4315_v48 = vpop.eup %4314 }
 0x21c   :  { %2971 = vperm.xlu0 %4124, %v4305_v17   ;;  %v4317_v50 = vpop.eup %4316  ;;  %4326 = vrcp.f32 %v2331_v26  ;;  %v1896_v0 = vadd.f32 %v4036_v2, %v3938_v6  ;;  %v2330_v21 = vadd.f32 1.0, %v4315_v48 }
 0x21d   :  { %4123 = vset.pattern.permute.xlu1 %v6308_v4  ;;  %v1890_v31 = vpop.f32.mrf.mxu0  ;;  %4328 = vpow2.f32 %v3559_v40 }
 0x21e   :  { %2611 = vperm.xlu1 %4123, %v4305_v17   ;;  %v1881_v17 = vadd.f32 %v1880_v37, %v1303_v20  ;;  %v2081_v6 = vadd.f32 %v5545_v13, %v1896_v0 }
 0x21f   :  { %v4039_v44 = vpop.f32.mrf.mxu0 }
 0x220   :  { %4125 = vset.pattern.permute.xlu0 %v6308_v4  ;;  %v2078_v59 = vadd.f32 %v5545_v13, %v1881_v17 }
 0x221   :  { %2606 = vperm.xlu0 %4125, %v4309_v52  }
 0x222   :  { %4126 = vset.pattern.permute.xlu1 %v6309_v39  ;;  %v3558_v37 = vmul.f32 -1.442695, %v2078_v59 }
 0x223   :  { %2967 = vperm.xlu1 %4126, %v4309_v52   ;;  %v1313_v52 = vpop.f32.mrf.mxu1  ;;  %v4319_v20 = vpop.eup %4318 }
 0x224   :  { %v4321_v1 = vpop.eup %4320  ;;  %v1891_v2 = vadd.f32 %v1890_v31, %v1313_v52  ;;  %v2333_v59 = vadd.f32 1.0, %v4319_v20  ;;  %4330 = vpow2.f32 %v3558_v37 }
 0x225   :  { %4128 = vset.pattern.permute.xlu0 %v6309_v39  ;;  %v3941_v45 = vpop.f32.mrf.mxu1  ;;  %4332 = vrcp.f32 %v2330_v21  ;;  %v4323_v52 = vpop.eup %4322 }
 0x226   :  { %2979 = vperm.xlu0 %4128, %v4313_v53   ;;  %v2080_v0 = vadd.f32 %v5545_v13, %v1891_v2  ;;  %v1906_v31 = vadd.f32 %v4039_v44, %v3941_v45  ;;  %v4325_v20 = vpop.eup %4324  ;;  %4334 = vrcp.f32 %v2333_v59  ;;  %v2332_v45 = vadd.f32 1.0, %v4323_v52 }
 0x227   :  { %4127 = vset.pattern.permute.xlu1 %v6308_v4  ;;  %v1323_v37 = vpop.f32.mrf.mxu1 }
 0x228   :  { %2621 = vperm.xlu1 %4127, %v4313_v53   ;;  %v4462_v53 = vld [vmem:[%s6253_s1 + $0x8] sm:$0xff] }
 0x229   :  { %v4327_v44 = vpop.eup %4326 }
 0x22a   :  { %4129 = vset.pattern.permute.xlu0 %v6308_v4  ;;  %v4329_v59 = vpop.eup %4328 }
 0x22b   :  { %2616 = vperm.xlu0 %4129, %v4317_v50  }
 0x22c   :  { %v2884_v51 = vpop.permute.xlu1 %2883  ;;  %v2502_v3 = vpop.permute.xlu0 %2501  ;;  %4130 = vset.pattern.permute.xlu1 %v6309_v39 }
 0x22d   :  { %v3135_v17 = vmul.f32 %v4462_v53, %v2884_v51  ;;  %v2815_v26 = vmul.f32 %v2502_v3, %v5110_v11  ;;  %2975 = vperm.xlu1 %4130, %v4317_v50   ;;  %v3561_v50 = vmul.f32 -1.442695, %v2081_v6  ;;  %v1900_v51 = vpop.f32.mrf.mxu0  ;;  %v3560_v53 = vmul.f32 -1.442695, %v2080_v0  ;;  %v4464_v0 = vld [vmem:[%s6253_s1 + $0x18] sm:$0xff] }
 0x22e   :  { %v2083_v6 = vadd.f32 %v5545_v13, %v1906_v31  ;;  %v1901_v2 = vadd.f32 %v1900_v51, %v1323_v37 }
 0x22f   :  { %v3199_v40 = vadd.f32 %v3135_v17, %v2815_v26  ;;  %4132 = vset.pattern.permute.xlu0 %v6309_v39  ;;  %4336 = vpow2.f32 %v3561_v50  ;;  %v4463_v26 = vld [vmem:[%s6253_s1] sm:$0xff]  ;;  %v4042_v37 = vpop.f32.mrf.mxu0 }
 0x230   :  { %2987 = vperm.xlu0 %4132, %v4321_v1   ;;  %v2497_v48 = vpop.permute.xlu0 %2496  ;;  %4338 = vpow2.f32 %v3560_v53  ;;  %v2082_v53 = vadd.f32 %v5545_v13, %v1901_v2  ;;  %v4466_v2 = vld [vmem:[%s6253_s1 + $0x28] sm:$0xff] }
 0x231   :  { %3263 = vst.msk [vmem:[%s6257_s8 + $0x8] sm:$0xff] %vm884_vm2, %v3199_v40  ;;  %v2512_v11 = vpop.permute.xlu1 %2511  ;;  %4131 = vset.pattern.permute.xlu1 %v6308_v4  ;;  %v2814_v17 = vmul.f32 %v2497_v48, %v5103_v9  ;;  %v3944_v9 = vpop.f32.mrf.mxu1  ;;  %4340 = vrcp.f32 %v2332_v45 }
 0x232   :  { %2631 = vperm.xlu1 %4131, %v4321_v1   ;;  %v2817_v48 = vmul.f32 %v2512_v11, %v5124_v18  ;;  %v4465_v18 = vld [vmem:[%s6253_s1 + $0x10] sm:$0xff] }
 0x234   :  { %4133 = vset.pattern.permute.xlu0 %v6308_v4 }
 0x235   :  { %v2507_v3 = vpop.permute.xlu1 %2506  ;;  %2626 = vperm.xlu0 %4133, %v4325_v20   ;;  %v2880_v21 = vpop.permute.xlu0 %2879 }
 0x236   :  { %v3134_v1 = vmul.f32 %v4463_v26, %v2880_v21  ;;  %4134 = vset.pattern.permute.xlu1 %v6309_v39  ;;  %v2816_v51 = vmul.f32 %v2507_v3, %v5120_v16  ;;  %v2335_v21 = vadd.f32 1.0, %v4329_v59  ;;  %v4331_v26 = vpop.eup %4330  ;;  %v1910_v16 = vpop.f32.mrf.mxu0 }
 0x237   :  { %2983 = vperm.xlu1 %4134, %v4325_v20   ;;  %v3563_v20 = vmul.f32 -1.442695, %v2083_v6  ;;  %v4333_v6 = vpop.eup %4332 }
 0x238   :  { %v3198_v40 = vadd.f32 %v3134_v1, %v2814_v17  ;;  %v1916_v1 = vadd.f32 %v4042_v37, %v3944_v9 }
 0x239   :  { %4136 = vset.pattern.permute.xlu0 %v6309_v39  ;;  %v2892_v50 = vpop.permute.xlu0 %2891  ;;  %4342 = vpow2.f32 %v3563_v20 }
 0x23a   :  { %3262 = vst.msk [vmem:[%s6257_s8] sm:$0xff] %vm884_vm2, %v3198_v40  ;;  %v3137_v52 = vmul.f32 %v4464_v0, %v2892_v50  ;;  %v2888_v31 = vpop.permute.xlu1 %2887  ;;  %2995 = vperm.xlu0 %4136, %v4327_v44   ;;  %v1333_v50 = vpop.f32.mrf.mxu1  ;;  %4344 = vrcp.f32 %v2335_v21  ;;  %v2334_v0 = vadd.f32 1.0, %v4331_v26 }
 0x23b   :  { %v3136_v11 = vmul.f32 %v4465_v18, %v2888_v31  ;;  %4135 = vset.pattern.permute.xlu1 %v6308_v4  ;;  %v1911_v31 = vadd.f32 %v1910_v16, %v1333_v50  ;;  %v4045_v21 = vpop.f32.mrf.mxu0 }
 0x23c   :  { %v3201_v17 = vadd.f32 %v3137_v52, %v2817_v48  ;;  %2641 = vperm.xlu1 %4135, %v4327_v44   ;;  %v3562_v44 = vmul.f32 -1.442695, %v2082_v53  ;;  %v4335_v48 = vpop.eup %4334  ;;  %v2085_v52 = vadd.f32 %v5545_v13, %v1916_v1  ;;  %v3947_v18 = vpop.f32.mrf.mxu1  ;;  %v4467_v53 = vld [vmem:[%s6253_s1 + $0x20] sm:$0xff] }
 0x23d   :  { %v3200_v40 = vadd.f32 %v3136_v11, %v2816_v51  ;;  %v2900_v45 = vpop.permute.xlu0 %2899  ;;  %v4337_v51 = vpop.eup %4336  ;;  %v5689_v1 = vld [vmem:[%s6256_s7] ss:$0 sm:$0xff] }
 0x23e   :  { %3265 = vst.msk [vmem:[%s6257_s8 + $0x18] sm:$0xff] %vm884_vm2, %v3201_v17  ;;  %4137 = vset.pattern.permute.xlu0 %v6308_v4  ;;  %v3139_v59 = vmul.f32 %v4466_v2, %v2900_v45  ;;  %4346 = vpow2.f32 %v3562_v44  ;;  %v3565_v11 = vmul.f32 -1.442695, %v2085_v52  ;;  %v2337_v26 = vadd.f32 1.0, %v4337_v51  ;;  %v4339_v45 = vpop.eup %4338  ;;  %v1920_v44 = vpop.f32.mrf.mxu0 }
 0x23f   :  { %3264 = vst.msk [vmem:[%s6257_s8 + $0x10] sm:$0xff] %vm884_vm2, %v3200_v40  ;;  %v2522_v3 = vpop.permute.xlu1 %2521  ;;  %2636 = vperm.xlu0 %4137, %v4333_v6   ;;  %4348 = vrcp.f32 %v2334_v0  ;;  %v2084_v40 = vadd.f32 %v5689_v1, %v1911_v31  ;;  %v4341_v16 = vpop.eup %4340  ;;  %v2336_v52 = vadd.f32 1.0, %v4339_v45 }
 0x240   :  { %v2819_v9 = vmul.f32 %v2522_v3, %v5134_v22  ;;  %4138 = vset.pattern.permute.xlu1 %v6309_v39  ;;  %v1343_v3 = vpop.f32.mrf.mxu1  ;;  %4350 = vpow2.f32 %v3565_v11 }
 0x241   :  { %2991 = vperm.xlu1 %4138, %v4333_v6   ;;  %v1926_v6 = vadd.f32 %v4045_v21, %v3947_v18  ;;  %4352 = vrcp.f32 %v2337_v26 }
 0x242   :  { %v3203_v20 = vadd.f32 %v3139_v59, %v2819_v9  ;;  %v2517_v37 = vpop.permute.xlu0 %2516  ;;  %v3564_v59 = vmul.f32 -1.442695, %v2084_v40  ;;  %v4469_v9 = vld [vmem:[%s6253_s1 + $0x38] sm:$0xff]  ;;  %v3950_v11 = vpop.f32.mrf.mxu1 }
 0x243   :  { %4140 = vset.pattern.permute.xlu0 %v6309_v39  ;;  %v2818_v13 = vmul.f32 %v2517_v37, %v5139_v25  ;;  %v2087_v31 = vadd.f32 %v5689_v1, %v1926_v6  ;;  %v1921_v37 = vadd.f32 %v1920_v44, %v1343_v3 }
 0x244   :  { %3267 = vst.msk [vmem:[%s6257_s8 + $0x28] sm:$0xff] %vm884_vm2, %v3203_v20  ;;  %v2896_v22 = vpop.permute.xlu1 %2895  ;;  %3003 = vperm.xlu0 %4140, %v4335_v48   ;;  %4354 = vpow2.f32 %v3564_v59  ;;  %v1353_v44 = vpop.f32.mrf.mxu1 }
 0x245   :  { %v3138_v17 = vmul.f32 %v4467_v53, %v2896_v22  ;;  %4139 = vset.pattern.permute.xlu1 %v6308_v4  ;;  %4356 = vrcp.f32 %v2336_v52  ;;  %v3567_v21 = vmul.f32 -1.442695, %v2087_v31  ;;  %v2086_v45 = vadd.f32 %v5689_v1, %v1921_v37 }
 0x246   :  { %2651 = vperm.xlu1 %4139, %v4335_v48   ;;  %v4343_v20 = vpop.eup %4342 }
 0x247   :  { %v3202_v50 = vadd.f32 %v3138_v17, %v2818_v13  ;;  %v2908_v25 = vpop.permute.xlu0 %2907  ;;  %v4345_v22 = vpop.eup %4344  ;;  %v4470_v17 = vld [vmem:[%s6253_s1 + $0x30] sm:$0xff]  ;;  %v2339_v40 = vadd.f32 1.0, %v4343_v20  ;;  %4358 = vpow2.f32 %v3567_v21  ;;  %v3566_v59 = vmul.f32 -1.442695, %v2086_v45 }
 0x248   :  { %4141 = vset.pattern.permute.xlu0 %v6308_v4  ;;  %v3141_v48 = vmul.f32 %v4469_v9, %v2908_v25  ;;  %v4048_v13 = vpop.f32.mrf.mxu0  ;;  %v4471_v9 = vld [vmem:[%s6253_s1 + $0x48] sm:$0xff] }
 0x249   :  { %3266 = vst.msk [vmem:[%s6257_s8 + $0x20] sm:$0xff] %vm884_vm2, %v3202_v50  ;;  %v2532_v2 = vpop.permute.xlu1 %2531  ;;  %2646 = vperm.xlu0 %4141, %v4341_v16   ;;  %v1936_v50 = vadd.f32 %v4048_v13, %v3950_v11  ;;  %4360 = vrcp.f32 %v2339_v40  ;;  %v3953_v11 = vpop.f32.mrf.mxu1 }
 0x24a   :  { %v2821_v0 = vmul.f32 %v2532_v2, %v5150_v30  ;;  %4142 = vset.pattern.permute.xlu1 %v6309_v39  ;;  %4362 = vpow2.f32 %v3566_v59 }
 0x24b   :  { %2999 = vperm.xlu1 %4142, %v4341_v16   ;;  %v4347_v6 = vpop.eup %4346  ;;  %v2089_v31 = vadd.f32 %v5689_v1, %v1936_v50 }
 0x24c   :  { %v3205_v51 = vadd.f32 %v3141_v48, %v2821_v0  ;;  %v2527_v18 = vpop.permute.xlu0 %2526  ;;  %v4349_v3 = vpop.eup %4348  ;;  %v2338_v52 = vadd.f32 1.0, %v4347_v6 }
 0x24d   :  { %4144 = vset.pattern.permute.xlu0 %v6309_v39  ;;  %v2820_v53 = vmul.f32 %v2527_v18, %v5155_v33  ;;  %v1930_v33 = vpop.f32.mrf.mxu0  ;;  %v4351_v20 = vpop.eup %4350 }
 0x24e   :  { %3269 = vst.msk [vmem:[%s6257_s8 + $0x38] sm:$0xff] %vm884_vm2, %v3205_v51  ;;  %v2904_v30 = vpop.permute.xlu1 %2903  ;;  %3011 = vperm.xlu0 %4144, %v4345_v22   ;;  %v1931_v37 = vadd.f32 %v1930_v33, %v1353_v44  ;;  %4364 = vrcp.f32 %v2338_v52 }
 0x24f   :  { %v3140_v26 = vmul.f32 %v4470_v17, %v2904_v30  ;;  %4143 = vset.pattern.permute.xlu1 %v6308_v4  ;;  %v3569_v30 = vmul.f32 -1.442695, %v2089_v31  ;;  %v4051_v21 = vpop.f32.mrf.mxu0 }
 0x250   :  { %2661 = vperm.xlu1 %4143, %v4345_v22   ;;  %v4353_v22 = vpop.eup %4352  ;;  %v2088_v40 = vadd.f32 %v5689_v1, %v1931_v37  ;;  %v1946_v6 = vadd.f32 %v4051_v21, %v3953_v11 }
 0x251   :  { %v3204_v25 = vadd.f32 %v3140_v26, %v2820_v53  ;;  %v2916_v16 = vpop.permute.xlu0 %2915  ;;  %v4472_v53 = vld [vmem:[%s6253_s1 + $0x40] sm:$0xff]  ;;  %v2341_v26 = vadd.f32 1.0, %v4351_v20  ;;  %v4355_v45 = vpop.eup %4354  ;;  %4366 = vpow2.f32 %v3569_v30  ;;  %v4474_v30 = vld [vmem:[%s6253_s1 + $0x50] sm:$0xff] }
 0x252   :  { %4145 = vset.pattern.permute.xlu0 %v6308_v4  ;;  %v3143_v48 = vmul.f32 %v4471_v9, %v2916_v16  ;;  %v4357_v16 = vpop.eup %4356  ;;  %v3568_v33 = vmul.f32 -1.442695, %v2088_v40 }
 0x253   :  { %3268 = vst.msk [vmem:[%s6257_s8 + $0x30] sm:$0xff] %vm884_vm2, %v3204_v25  ;;  %v2542_v2 = vpop.permute.xlu1 %2541  ;;  %2656 = vperm.xlu0 %4145, %v4349_v3   ;;  %4368 = vrcp.f32 %v2341_v26 }
 0x254   :  { %v2823_v0 = vmul.f32 %v2542_v2, %v5166_v38  ;;  %4146 = vset.pattern.permute.xlu1 %v6309_v39  ;;  %v4473_v2 = vld [vmem:[%s6253_s1 + $0x58] sm:$0xff]  ;;  %v4359_v52 = vpop.eup %4358  ;;  %4370 = vpow2.f32 %v3568_v33 }
 0x255   :  { %3007 = vperm.xlu1 %4146, %v4349_v3   ;;  %v1363_v3 = vpop.f32.mrf.mxu1 }
 0x256   :  { %v3207_v51 = vadd.f32 %v3143_v48, %v2823_v0  ;;  %v2537_v18 = vpop.permute.xlu0 %2536  ;;  %v2340_v48 = vadd.f32 1.0, %v4355_v45  ;;  %v2091_v0 = vadd.f32 %v5689_v1, %v1946_v6 }
 0x257   :  { %4148 = vset.pattern.permute.xlu0 %v6309_v39  ;;  %v2822_v13 = vmul.f32 %v2537_v18, %v5171_v41  ;;  %v1940_v41 = vpop.f32.mrf.mxu0  ;;  %v3956_v18 = vpop.f32.mrf.mxu1 }
 0x258   :  { %3271 = vst.msk [vmem:[%s6257_s8 + $0x48] sm:$0xff] %vm884_vm2, %v3207_v51  ;;  %v2912_v38 = vpop.permute.xlu1 %2911  ;;  %3019 = vperm.xlu0 %4148, %v4353_v22   ;;  %v1941_v31 = vadd.f32 %v1940_v41, %v1363_v3  ;;  %v4361_v51 = vpop.eup %4360  ;;  %4372 = vrcp.f32 %v2340_v48  ;;  %v4475_v3 = vld [vmem:[%s6253_s1 + $0x68] sm:$0xff] }
 0x259   :  { %v3142_v17 = vmul.f32 %v4472_v53, %v2912_v38  ;;  %4147 = vset.pattern.permute.xlu1 %v6308_v4  ;;  %v4054_v11 = vpop.f32.mrf.mxu0 }
 0x25a   :  { %2671 = vperm.xlu1 %4147, %v4353_v22   ;;  %v3571_v22 = vmul.f32 -1.442695, %v2091_v0  ;;  %v2090_v53 = vadd.f32 %v5689_v1, %v1941_v31  ;;  %v1956_v26 = vadd.f32 %v4054_v11, %v3956_v18  ;;  %v4476_v18 = vld [vmem:[%s6253_s1 + $0x60] sm:$0xff] }
 0x25b   :  { %v3206_v50 = vadd.f32 %v3142_v17, %v2822_v13  ;;  %v2924_v25 = vpop.permute.xlu0 %2923  ;;  %v2343_v13 = vadd.f32 1.0, %v4359_v52  ;;  %v4363_v17 = vpop.eup %4362 }
 0x25c   :  { %4149 = vset.pattern.permute.xlu0 %v6308_v4  ;;  %v3145_v59 = vmul.f32 %v4473_v2, %v2924_v25  ;;  %v4365_v6 = vpop.eup %4364  ;;  %4374 = vpow2.f32 %v3571_v22  ;;  %v2342_v33 = vadd.f32 1.0, %v4363_v17  ;;  %v2093_v2 = vadd.f32 %v5689_v1, %v1956_v26 }
 0x25d   :  { %3270 = vst.msk [vmem:[%s6257_s8 + $0x40] sm:$0xff] %vm884_vm2, %v3206_v50  ;;  %v2552_v44 = vpop.permute.xlu1 %2551  ;;  %2666 = vperm.xlu0 %4149, %v4357_v16   ;;  %v1373_v50 = vpop.f32.mrf.mxu1  ;;  %4376 = vrcp.f32 %v2343_v13 }
 0x25e   :  { %v2825_v9 = vmul.f32 %v2552_v44, %v5182_v46  ;;  %4150 = vset.pattern.permute.xlu1 %v6309_v39 }
 0x25f   :  { %3015 = vperm.xlu1 %4150, %v4357_v16   ;;  %v3570_v16 = vmul.f32 -1.442695, %v2090_v53  ;;  %v3959_v31 = vpop.f32.mrf.mxu1 }
 0x260   :  { %v3209_v20 = vadd.f32 %v3145_v59, %v2825_v9  ;;  %v2547_v37 = vpop.permute.xlu0 %2546  ;;  %v4367_v59 = vpop.eup %4366 }
 0x261   :  { %4152 = vset.pattern.permute.xlu0 %v6309_v39  ;;  %v2824_v38 = vmul.f32 %v2547_v37, %v5187_v49  ;;  %v1950_v49 = vpop.f32.mrf.mxu0  ;;  %v4369_v52 = vpop.eup %4368  ;;  %4378 = vpow2.f32 %v3570_v16  ;;  %v2345_v22 = vadd.f32 1.0, %v4367_v59 }
 0x262   :  { %3273 = vst.msk [vmem:[%s6257_s8 + $0x58] sm:$0xff] %vm884_vm2, %v3209_v20  ;;  %v2920_v46 = vpop.permute.xlu1 %2919  ;;  %3027 = vperm.xlu0 %4152, %v4361_v51   ;;  %v1951_v9 = vadd.f32 %v1950_v49, %v1373_v50  ;;  %4380 = vrcp.f32 %v2342_v33  ;;  %v3573_v20 = vmul.f32 -1.442695, %v2093_v2  ;;  %v1383_v17 = vpop.f32.mrf.mxu1 }
 0x263   :  { %v3144_v21 = vmul.f32 %v4474_v30, %v2920_v46  ;;  %4151 = vset.pattern.permute.xlu1 %v6308_v4  ;;  %v4057_v37 = vpop.f32.mrf.mxu0 }
 0x264   :  { %2681 = vperm.xlu1 %4151, %v4361_v51   ;;  %v2092_v11 = vadd.f32 %v5689_v1, %v1951_v9  ;;  %v1966_v30 = vadd.f32 %v4057_v37, %v3959_v31  ;;  %4382 = vpow2.f32 %v3573_v20  ;;  %v3962_v2 = vpop.f32.mrf.mxu1 }
 0x265   :  { %v3208_v40 = vadd.f32 %v3144_v21, %v2824_v38  ;;  %v2932_v45 = vpop.permute.xlu0 %2931  ;;  %v4371_v38 = vpop.eup %4370  ;;  %4384 = vrcp.f32 %v2345_v22 }
 0x266   :  { %4153 = vset.pattern.permute.xlu0 %v6308_v4  ;;  %v3147_v41 = vmul.f32 %v4475_v3, %v2932_v45  ;;  %v4373_v53 = vpop.eup %4372  ;;  %v4477_v45 = vld [vmem:[%s6253_s1 + $0x78] sm:$0xff]  ;;  %v2344_v49 = vadd.f32 1.0, %v4371_v38  ;;  %v1393_v22 = vpop.f32.mrf.mxu1 }
 0x267   :  { %3272 = vst.msk [vmem:[%s6257_s8 + $0x50] sm:$0xff] %vm884_vm2, %v3208_v40  ;;  %v2562_v25 = vpop.permute.xlu1 %2561  ;;  %2676 = vperm.xlu0 %4153, %v4365_v6   ;;  %v3572_v40 = vmul.f32 -1.442695, %v2092_v11 }
 0x268   :  { %v2827_v44 = vmul.f32 %v2562_v25, %v5198_v54  ;;  %4154 = vset.pattern.permute.xlu1 %v6309_v39  ;;  %v2095_v25 = vadd.f32 %v5689_v1, %v1966_v30  ;;  %v4479_v30 = vld [vmem:[%s6253_s1 + $0x88] sm:$0xff] }
 0x269   :  { %3023 = vperm.xlu1 %4154, %v4365_v6   ;;  %v4375_v16 = vpop.eup %4374  ;;  %4386 = vpow2.f32 %v3572_v40 }
 0x26a   :  { %v3211_v48 = vadd.f32 %v3147_v41, %v2827_v44  ;;  %v2557_v0 = vpop.permute.xlu0 %2556  ;;  %v4377_v33 = vpop.eup %4376  ;;  %4388 = vrcp.f32 %v2344_v49  ;;  %v3575_v59 = vmul.f32 -1.442695, %v2095_v25  ;;  %v2347_v31 = vadd.f32 1.0, %v4375_v16 }
 0x26b   :  { %4156 = vset.pattern.permute.xlu0 %v6309_v39  ;;  %v2826_v51 = vmul.f32 %v2557_v0, %v5201_v56  ;;  %v1960_v56 = vpop.f32.mrf.mxu0  ;;  %v4478_v0 = vld [vmem:[%s6253_s1 + $0x70] sm:$0xff] }
 0x26c   :  { %3275 = vst.msk [vmem:[%s6257_s8 + $0x68] sm:$0xff] %vm884_vm2, %v3211_v48  ;;  %v2928_v54 = vpop.permute.xlu1 %2927  ;;  %3035 = vperm.xlu0 %4156, %v4369_v52   ;;  %v1961_v3 = vadd.f32 %v1960_v56, %v1383_v17  ;;  %4390 = vpow2.f32 %v3575_v59 }
 0x26d   :  { %v3146_v46 = vmul.f32 %v4476_v18, %v2928_v54  ;;  %4155 = vset.pattern.permute.xlu1 %v6308_v4  ;;  %v4060_v9 = vpop.f32.mrf.mxu0  ;;  %4392 = vrcp.f32 %v2347_v31 }
 0x26e   :  { %2691 = vperm.xlu1 %4155, %v4369_v52   ;;  %v2094_v54 = vadd.f32 %v5689_v1, %v1961_v3  ;;  %v4379_v20 = vpop.eup %4378  ;;  %v1976_v37 = vadd.f32 %v4060_v9, %v3962_v2  ;;  %v4480_v3 = vld [vmem:[%s6253_s1 + $0x80] sm:$0xff] }
 0x26f   :  { %v3210_v21 = vadd.f32 %v3146_v46, %v2826_v51  ;;  %v2940_v13 = vpop.permute.xlu0 %2939  ;;  %v4381_v46 = vpop.eup %4380 }
 0x270   :  { %4157 = vset.pattern.permute.xlu0 %v6308_v4  ;;  %v3149_v6 = vmul.f32 %v4477_v45, %v2940_v13  ;;  %v3574_v38 = vmul.f32 -1.442695, %v2094_v54  ;;  %v2097_v17 = vadd.f32 %v5689_v1, %v1976_v37  ;;  %v4481_v54 = vld [vmem:[%s6253_s1 + $0x98] sm:$0xff] }
 0x271   :  { %3274 = vst.msk [vmem:[%s6257_s8 + $0x60] sm:$0xff] %vm884_vm2, %v3210_v21  ;;  %v2572_v26 = vpop.permute.xlu1 %2571  ;;  %2686 = vperm.xlu0 %4157, %v4373_v53   ;;  %v4383_v56 = vpop.eup %4382 }
 0x272   :  { %v2829_v50 = vmul.f32 %v2572_v26, %v5212_v61  ;;  %4158 = vset.pattern.permute.xlu1 %v6309_v39  ;;  %4394 = vpow2.f32 %v3574_v38  ;;  %v3577_v49 = vmul.f32 -1.442695, %v2097_v17  ;;  %v4482_v17 = vld [vmem:[%s6253_s1 + $0x90] sm:$0xff] }
 0x273   :  { %3031 = vperm.xlu1 %4158, %v4373_v53   ;;  %v2346_v53 = vadd.f32 1.0, %v4379_v20 }
 0x274   :  { %v3213_v41 = vadd.f32 %v3149_v6, %v2829_v50  ;;  %v2567_v44 = vpop.permute.xlu0 %2566  ;;  %v4385_v6 = vpop.eup %4384 }
 0x275   :  { %4160 = vset.pattern.permute.xlu0 %v6309_v39  ;;  %v2828_v48 = vmul.f32 %v2567_v44, %v5215_v63  ;;  %v1970_v63 = vpop.f32.mrf.mxu0  ;;  %v3965_v50 = vpop.f32.mrf.mxu1  ;;  %4396 = vrcp.f32 %v2346_v53  ;;  %v2349_v44 = vadd.f32 1.0, %v4383_v56 }
 0x276   :  { %3277 = vst.msk [vmem:[%s6257_s8 + $0x78] sm:$0xff] %vm884_vm2, %v3213_v41  ;;  %v2936_v61 = vpop.permute.xlu1 %2935  ;;  %3043 = vperm.xlu0 %4160, %v4377_v33   ;;  %v1971_v26 = vadd.f32 %v1970_v63, %v1393_v22  ;;  %v4387_v2 = vpop.eup %4386  ;;  %4398 = vpow2.f32 %v3577_v49 }
 0x277   :  { %v3148_v52 = vmul.f32 %v4478_v0, %v2936_v61  ;;  %4159 = vset.pattern.permute.xlu1 %v6308_v4  ;;  %v4063_v25 = vpop.f32.mrf.mxu0  ;;  %v1403_v0 = vpop.f32.mrf.mxu1  ;;  %4400 = vrcp.f32 %v2349_v44 }
 0x278   :  { %2701 = vperm.xlu1 %4159, %v4377_v33   ;;  %v2096_v33 = vadd.f32 %v5689_v1, %v1971_v26  ;;  %v1986_v61 = vadd.f32 %v4063_v25, %v3965_v50 }
 0x279   :  { %v3212_v51 = vadd.f32 %v3148_v52, %v2828_v48  ;;  %v2948_v18 = vpop.permute.xlu0 %2947  ;;  %v4389_v48 = vpop.eup %4388 }
 0x27a   :  { %4161 = vset.pattern.permute.xlu0 %v6308_v4  ;;  %v3151_v21 = vmul.f32 %v4479_v30, %v2948_v18  ;;  %v3576_v31 = vmul.f32 -1.442695, %v2096_v33  ;;  %v2099_v18 = vadd.f32 %v5689_v1, %v1986_v61  ;;  %v3968_v30 = vpop.f32.mrf.mxu1 }
 0x27b   :  { %3276 = vst.msk [vmem:[%s6257_s8 + $0x70] sm:$0xff] %vm884_vm2, %v3212_v51  ;;  %v2582_v11 = vpop.permute.xlu1 %2581  ;;  %2696 = vperm.xlu0 %4161, %v4381_v46   ;;  %v2348_v51 = vadd.f32 1.0, %v4387_v2 }
 0x27c   :  { %v2831_v13 = vmul.f32 %v2582_v11, %v5226_v5  ;;  %4162 = vset.pattern.permute.xlu1 %v6309_v39  ;;  %4402 = vpow2.f32 %v3576_v31  ;;  %v1413_v25 = vpop.f32.mrf.mxu1 }
 0x27d   :  { %3039 = vperm.xlu1 %4162, %v4381_v46   ;;  %v4391_v46 = vpop.eup %4390  ;;  %4404 = vrcp.f32 %v2348_v51 }
 0x27e   :  { %v3215_v40 = vadd.f32 %v3151_v21, %v2831_v13  ;;  %v2577_v45 = vpop.permute.xlu0 %2576  ;;  %v4393_v38 = vpop.eup %4392  ;;  %v3579_v21 = vmul.f32 -1.442695, %v2099_v18  ;;  %v2351_v26 = vadd.f32 1.0, %v4391_v46 }
 0x27f   :  { %4164 = vset.pattern.permute.xlu0 %v6309_v39  ;;  %v2830_v16 = vmul.f32 %v2577_v45, %v5229_v8  ;;  %v1980_v8 = vpop.f32.mrf.mxu0  ;;  %v4395_v45 = vpop.eup %4394 }
 0x280   :  { %3279 = vst.msk [vmem:[%s6257_s8 + $0x88] sm:$0xff] %vm884_vm2, %v3215_v40  ;;  %v2944_v5 = vpop.permute.xlu1 %2943  ;;  %3051 = vperm.xlu0 %4164, %v4385_v6   ;;  %v1981_v22 = vadd.f32 %v1980_v8, %v1403_v0  ;;  %4406 = vpow2.f32 %v3579_v21  ;;  %v2350_v2 = vadd.f32 1.0, %v4395_v45 }
 0x281   :  { %v3150_v41 = vmul.f32 %v4480_v3, %v2944_v5  ;;  %4163 = vset.pattern.permute.xlu1 %v6308_v4  ;;  %v4066_v13 = vpop.f32.mrf.mxu0  ;;  %4408 = vrcp.f32 %v2351_v26 }
 0x282   :  { %2711 = vperm.xlu1 %4163, %v4385_v6   ;;  %v2098_v40 = vadd.f32 %v5689_v1, %v1981_v22  ;;  %v1996_v6 = vadd.f32 %v4066_v13, %v3968_v30  ;;  %v4397_v49 = vpop.eup %4396 }
 0x283   :  { %v3214_v59 = vadd.f32 %v3150_v41, %v2830_v16  ;;  %v2956_v9 = vpop.permute.xlu0 %2955  ;;  %v4483_v41 = vld [vmem:[%s6253_s1 + $0xa8] sm:$0xff] }
 0x284   :  { %4165 = vset.pattern.permute.xlu0 %v6308_v4  ;;  %v3153_v20 = vmul.f32 %v4481_v54, %v2956_v9  ;;  %v3578_v3 = vmul.f32 -1.442695, %v2098_v40  ;;  %v2101_v61 = vadd.f32 %v5689_v1, %v1996_v6 }
 0x285   :  { %3278 = vst.msk [vmem:[%s6257_s8 + $0x80] sm:$0xff] %vm884_vm2, %v3214_v59  ;;  %v2592_v52 = vpop.permute.xlu1 %2591  ;;  %2706 = vperm.xlu0 %4165, %v4389_v48   ;;  %v4399_v59 = vpop.eup %4398 }
 0x286   :  { %v2833_v37 = vmul.f32 %v2592_v52, %v5240_v15  ;;  %4166 = vset.pattern.permute.xlu1 %v6309_v39  ;;  %v4401_v8 = vpop.eup %4400  ;;  %4410 = vpow2.f32 %v3578_v3  ;;  %v3971_v52 = vpop.f32.mrf.mxu1  ;;  %v3581_v31 = vmul.f32 -1.442695, %v2101_v61  ;;  %v2353_v18 = vadd.f32 1.0, %v4399_v59 }
 0x287   :  { %3047 = vperm.xlu1 %4166, %v4389_v48   ;;  %4412 = vrcp.f32 %v2350_v2 }
 0x288   :  { %v3217_v63 = vadd.f32 %v3153_v20, %v2833_v37  ;;  %v2587_v11 = vpop.permute.xlu0 %2586  ;;  %v4484_v37 = vld [vmem:[%s6253_s1 + $0xa0] sm:$0xff]  ;;  %4414 = vpow2.f32 %v3581_v31  ;;  %v4487_v31 = vld [vmem:[%s6253_s1 + $0xc8] sm:$0xff] }
 0x289   :  { %4168 = vset.pattern.permute.xlu0 %v6309_v39  ;;  %v2832_v53 = vmul.f32 %v2587_v11, %v5243_v19  ;;  %v1990_v19 = vpop.f32.mrf.mxu0  ;;  %v4403_v22 = vpop.eup %4402  ;;  %4416 = vrcp.f32 %v2353_v18 }
 0x28a   :  { %3281 = vst.msk [vmem:[%s6257_s8 + $0x98] sm:$0xff] %vm884_vm2, %v3217_v63  ;;  %v2952_v15 = vpop.permute.xlu1 %2951  ;;  %3059 = vperm.xlu0 %4168, %v4393_v38   ;;  %v1991_v9 = vadd.f32 %v1990_v19, %v1413_v25  ;;  %v4405_v30 = vpop.eup %4404  ;;  %v2352_v26 = vadd.f32 1.0, %v4403_v22 }
 0x28b   :  { %v3152_v56 = vmul.f32 %v4482_v17, %v2952_v15  ;;  %4167 = vset.pattern.permute.xlu1 %v6308_v4  ;;  %v4069_v54 = vpop.f32.mrf.mxu0  ;;  %v1423_v15 = vpop.f32.mrf.mxu1 }
 0x28c   :  { %2721 = vperm.xlu1 %4167, %v4393_v38   ;;  %v2100_v46 = vadd.f32 %v5689_v1, %v1991_v9  ;;  %v2006_v63 = vadd.f32 %v4069_v54, %v3971_v52 }
 0x28d   :  { %v3216_v50 = vadd.f32 %v3152_v56, %v2832_v53  ;;  %v2964_v5 = vpop.permute.xlu0 %2963  ;;  %v4485_v53 = vld [vmem:[%s6253_s1 + $0xb8] sm:$0xff]  ;;  %v4407_v45 = vpop.eup %4406 }
 0x28e   :  { %4169 = vset.pattern.permute.xlu0 %v6308_v4  ;;  %v3155_v44 = vmul.f32 %v4483_v41, %v2964_v5  ;;  %v3580_v13 = vmul.f32 -1.442695, %v2100_v46  ;;  %v2103_v40 = vadd.f32 %v5689_v1, %v2006_v63  ;;  %v3974_v25 = vpop.f32.mrf.mxu1  ;;  %v4486_v41 = vld [vmem:[%s6253_s1 + $0xb0] sm:$0xff] }
 0x28f   :  { %3280 = vst.msk [vmem:[%s6257_s8 + $0x90] sm:$0xff] %vm884_vm2, %v3216_v50  ;;  %v2602_v16 = vpop.permute.xlu1 %2601  ;;  %2716 = vperm.xlu0 %4169, %v4397_v49  }
 0x290   :  { %v2835_v33 = vmul.f32 %v2602_v16, %v5254_v29  ;;  %4170 = vset.pattern.permute.xlu1 %v6309_v39  ;;  %4418 = vpow2.f32 %v3580_v13  ;;  %v3583_v16 = vmul.f32 -1.442695, %v2103_v40  ;;  %v1433_v9 = vpop.f32.mrf.mxu1  ;;  %v4488_v13 = vld [vmem:[%s6253_s1 + $0xc0] sm:$0xff] }
 0x291   :  { %3055 = vperm.xlu1 %4170, %v4397_v49   ;;  %v4409_v49 = vpop.eup %4408  ;;  %4420 = vrcp.f32 %v2352_v26 }
 0x292   :  { %v3219_v48 = vadd.f32 %v3155_v44, %v2835_v33  ;;  %v2597_v0 = vpop.permute.xlu0 %2596  ;;  %v2355_v33 = vadd.f32 1.0, %v4407_v45  ;;  %4422 = vpow2.f32 %v3583_v16  ;;  %v3977_v18 = vpop.f32.mrf.mxu1 }
 0x293   :  { %4172 = vset.pattern.permute.xlu0 %v6309_v39  ;;  %v2834_v20 = vmul.f32 %v2597_v0, %v5257_v34  ;;  %v2000_v34 = vpop.f32.mrf.mxu0  ;;  %v4411_v61 = vpop.eup %4410 }
 0x294   :  { %3283 = vst.msk [vmem:[%s6257_s8 + $0xa8] sm:$0xff] %vm884_vm2, %v3219_v48  ;;  %v2960_v29 = vpop.permute.xlu1 %2959  ;;  %3067 = vperm.xlu0 %4172, %v4401_v8   ;;  %v2001_v6 = vadd.f32 %v2000_v34, %v1423_v15  ;;  %4424 = vrcp.f32 %v2355_v33  ;;  %v1443_v34 = vpop.f32.mrf.mxu1 }
 0x295   :  { %v3154_v51 = vmul.f32 %v4484_v37, %v2960_v29  ;;  %4171 = vset.pattern.permute.xlu1 %v6308_v4  ;;  %v4072_v19 = vpop.f32.mrf.mxu0  ;;  %v2354_v37 = vadd.f32 1.0, %v4411_v61 }
 0x296   :  { %2731 = vperm.xlu1 %4171, %v4401_v8   ;;  %v2102_v2 = vadd.f32 %v5689_v1, %v2001_v6  ;;  %v2016_v59 = vadd.f32 %v4072_v19, %v3974_v25  ;;  %v4413_v8 = vpop.eup %4412 }
 0x297   :  { %v3218_v11 = vadd.f32 %v3154_v51, %v2834_v20  ;;  %v2972_v38 = vpop.permute.xlu0 %2971  ;;  %v2010_v52 = vpop.f32.mrf.mxu0 }
 0x298   :  { %4173 = vset.pattern.permute.xlu0 %v6308_v4  ;;  %v3157_v17 = vmul.f32 %v4485_v53, %v2972_v38  ;;  %v3582_v29 = vmul.f32 -1.442695, %v2102_v2  ;;  %v2105_v51 = vadd.f32 %v5689_v1, %v2016_v59  ;;  %v4415_v46 = vpop.eup %4414  ;;  %v2011_v22 = vadd.f32 %v2010_v52, %v1433_v9 }
 0x299   :  { %3282 = vst.msk [vmem:[%s6257_s8 + $0xa0] sm:$0xff] %vm884_vm2, %v3218_v11  ;;  %v2612_v21 = vpop.permute.xlu1 %2611  ;;  %2726 = vperm.xlu0 %4173, %v4405_v30   ;;  %v4075_v63 = vpop.f32.mrf.mxu0 }
 0x29a   :  { %v2837_v56 = vmul.f32 %v2612_v21, %v5268_v43  ;;  %4174 = vset.pattern.permute.xlu1 %v6309_v39  ;;  %4426 = vpow2.f32 %v3582_v29  ;;  %v3585_v15 = vmul.f32 -1.442695, %v2105_v51  ;;  %v2026_v45 = vadd.f32 %v4075_v63, %v3977_v18 }
 0x29b   :  { %3063 = vperm.xlu1 %4174, %v4405_v30   ;;  %v4417_v30 = vpop.eup %4416  ;;  %4428 = vrcp.f32 %v2354_v37  ;;  %v2020_v26 = vpop.f32.mrf.mxu0 }
 0x29c   :  { %v3221_v50 = vadd.f32 %v3157_v17, %v2837_v56  ;;  %v2607_v5 = vpop.permute.xlu0 %2606  ;;  %v2357_v17 = vadd.f32 1.0, %v4415_v46  ;;  %v2104_v56 = vadd.f32 %v5689_v1, %v2011_v22  ;;  %4430 = vpow2.f32 %v3585_v15 }
 0x29d   :  { %4176 = vset.pattern.permute.xlu0 %v6309_v39  ;;  %v2836_v3 = vmul.f32 %v2607_v5, %v5271_v47  ;;  %v4419_v40 = vpop.eup %4418  ;;  %v4078_v19 = vpop.f32.mrf.mxu0  ;;  %v2021_v2 = vadd.f32 %v2020_v26, %v1443_v34 }
 0x29e   :  { %3285 = vst.msk [vmem:[%s6257_s8 + $0xb8] sm:$0xff] %vm884_vm2, %v3221_v50  ;;  %v2968_v43 = vpop.permute.xlu1 %2967  ;;  %3075 = vperm.xlu0 %4176, %v4409_v49   ;;  %v4421_v5 = vpop.eup %4420  ;;  %4432 = vrcp.f32 %v2357_v17  ;;  %v3584_v25 = vmul.f32 -1.442695, %v2104_v56 }
 0x29f   :  { %v3156_v44 = vmul.f32 %v4486_v41, %v2968_v43  ;;  %4175 = vset.pattern.permute.xlu1 %v6308_v4  ;;  %v4489_v43 = vld [vmem:[%s6253_s1 + $0xd8] sm:$0xff]  ;;  %v2356_v41 = vadd.f32 1.0, %v4419_v40  ;;  %v4423_v33 = vpop.eup %4422  ;;  %v4492_v40 = vld [vmem:[%s6253_s1 + $0xe0] sm:$0xff] }
 0x2a0   :  { %2741 = vperm.xlu1 %4175, %v4409_v49   ;;  %4434 = vpow2.f32 %v3584_v25  ;;  %v4493_v25 = vld [vmem:[%s6253_s1 + $0xf8] sm:$0xff] }
 0x2a1   :  { %v3220_v48 = vadd.f32 %v3156_v44, %v2836_v3  ;;  %v2980_v0 = vpop.permute.xlu0 %2979  ;;  %v2107_v44 = vadd.f32 %v5689_v1, %v2026_v45  ;;  %v4425_v9 = vpop.eup %4424  ;;  %4436 = vrcp.f32 %v2356_v41 }
 0x2a2   :  { %4177 = vset.pattern.permute.xlu0 %v6308_v4  ;;  %v3159_v54 = vmul.f32 %v4487_v31, %v2980_v0  ;;  %v2030_v0 = vpop.f32.mrf.mxu0  ;;  %v2359_v31 = vadd.f32 1.0, %v4423_v33 }
 0x2a3   :  { %3284 = vst.msk [vmem:[%s6257_s8 + $0xb0] sm:$0xff] %vm884_vm2, %v3220_v48  ;;  %v2622_v47 = vpop.permute.xlu1 %2621  ;;  %2736 = vperm.xlu0 %4177, %v4413_v8  }
 0x2a4   :  { %v2839_v20 = vmul.f32 %v2622_v47, %v5282_v57  ;;  %4178 = vset.pattern.permute.xlu1 %v6309_v39  ;;  %v4490_v47 = vld [vmem:[%s6253_s1 + $0xd0] sm:$0xff] }
 0x2a5   :  { %3071 = vperm.xlu1 %4178, %v4413_v8   ;;  %v3587_v8 = vmul.f32 -1.442695, %v2107_v44 }
 0x2a6   :  { %v3223_v11 = vadd.f32 %v3159_v54, %v2839_v20  ;;  %v2617_v38 = vpop.permute.xlu0 %2616  ;;  %v2106_v54 = vadd.f32 %v5689_v1, %v2021_v2 }
 0x2a7   :  { %4180 = vset.pattern.permute.xlu0 %v6309_v39  ;;  %v2838_v21 = vmul.f32 %v2617_v38, %v5285_v60  ;;  %v3980_v60 = vpop.f32.mrf.mxu1  ;;  %v4427_v20 = vpop.eup %4426  ;;  %4438 = vpow2.f32 %v3587_v8 }
 0x2a8   :  { %3287 = vst.msk [vmem:[%s6257_s8 + $0xc8] sm:$0xff] %vm884_vm2, %v3223_v11  ;;  %v2976_v57 = vpop.permute.xlu1 %2975  ;;  %3083 = vperm.xlu0 %4180, %v4417_v30   ;;  %v4429_v46 = vpop.eup %4428  ;;  %4440 = vrcp.f32 %v2359_v31  ;;  %v3586_v63 = vmul.f32 -1.442695, %v2106_v54  ;;  %v4491_v11 = vld [vmem:[%s6253_s1 + $0xe8] sm:$0xff] }
 0x2a9   :  { %v3158_v53 = vmul.f32 %v4488_v13, %v2976_v57  ;;  %4179 = vset.pattern.permute.xlu1 %v6308_v4  ;;  %v1453_v48 = vpop.f32.mrf.mxu1  ;;  %v2358_v57 = vadd.f32 1.0, %v4427_v20  ;;  %v4431_v34 = vpop.eup %4430 }
 0x2aa   :  { %2751 = vperm.xlu1 %4179, %v4417_v30   ;;  %v2031_v37 = vadd.f32 %v2030_v0, %v1453_v48  ;;  %4442 = vpow2.f32 %v3586_v63 }
 0x2ab   :  { %v3222_v6 = vadd.f32 %v3158_v53, %v2838_v21  ;;  %v2988_v50 = vpop.permute.xlu0 %2987  ;;  %v4433_v53 = vpop.eup %4432  ;;  %4444 = vrcp.f32 %v2358_v57 }
 0x2ac   :  { %4181 = vset.pattern.permute.xlu0 %v6308_v4  ;;  %v3161_v16 = vmul.f32 %v4489_v43, %v2988_v50  ;;  %v2108_v15 = vadd.f32 %v5689_v1, %v2031_v37 }
 0x2ad   :  { %3286 = vst.msk [vmem:[%s6257_s8 + $0xc0] sm:$0xff] %vm884_vm2, %v3222_v6  ;;  %v2632_v49 = vpop.permute.xlu1 %2631  ;;  %2746 = vperm.xlu0 %4181, %v4421_v5   ;;  %v2361_v6 = vadd.f32 1.0, %v4431_v34 }
 0x2ae   :  { %v2841_v3 = vmul.f32 %v2632_v49, %v5294_v7  ;;  %4182 = vset.pattern.permute.xlu1 %v6309_v39  ;;  %v3588_v56 = vmul.f32 -1.442695, %v2108_v15  ;;  %v4497_v15 = vld [vmem:[%s6253_s1 + $0x118] sm:$0xff] }
 0x2af   :  { %3079 = vperm.xlu1 %4182, %v4421_v5  }
 0x2b0   :  { %v3225_v61 = vadd.f32 %v3161_v16, %v2841_v3  ;;  %v2627_v59 = vpop.permute.xlu0 %2626  ;;  %4446 = vpow2.f32 %v3588_v56 }
 0x2b1   :  { %4184 = vset.pattern.permute.xlu0 %v6309_v39  ;;  %v2840_v52 = vmul.f32 %v2627_v59, %v5299_v12  ;;  %v2036_v12 = vadd.f32 %v4078_v19, %v3980_v60  ;;  %4448 = vrcp.f32 %v2361_v6 }
 0x2b2   :  { %3289 = vst.msk [vmem:[%s6257_s8 + $0xd8] sm:$0xff] %vm884_vm2, %v3225_v61  ;;  %v2984_v7 = vpop.permute.xlu1 %2983  ;;  %3091 = vperm.xlu0 %4184, %v4425_v9   ;;  %v4494_v61 = vld [vmem:[%s6253_s1 + $0xf0] sm:$0xff] }
 0x2b3   :  { %v3160_v29 = vmul.f32 %v4490_v47, %v2984_v7  ;;  %4183 = vset.pattern.permute.xlu1 %v6308_v4  ;;  %v2109_v17 = vadd.f32 %v5689_v1, %v2036_v12  ;;  %v4435_v1 = vpop.eup %4434 }
 0x2b4   :  { %2761 = vperm.xlu1 %4183, %v4425_v9   ;;  %v4437_v60 = vpop.eup %4436  ;;  %v2360_v16 = vadd.f32 1.0, %v4435_v1 }
 0x2b5   :  { %v3224_v51 = vadd.f32 %v3160_v29, %v2840_v52  ;;  %v2996_v18 = vpop.permute.xlu0 %2995  ;;  %v3589_v49 = vmul.f32 -1.442695, %v2109_v17  ;;  %v4439_v3 = vpop.eup %4438  ;;  %v4495_v52 = vld [vmem:[%s6253_s1 + $0x108] sm:$0xff] }
 0x2b6   :  { %4185 = vset.pattern.permute.xlu0 %v6308_v4  ;;  %v3163_v38 = vmul.f32 %v4491_v11, %v2996_v18  ;;  %v4441_v33 = vpop.eup %4440  ;;  %v2363_v9 = vadd.f32 1.0, %v4439_v3 }
 0x2b7   :  { %3288 = vst.msk [vmem:[%s6257_s8 + $0xd0] sm:$0xff] %vm884_vm2, %v3224_v51  ;;  %v2642_v22 = vpop.permute.xlu1 %2641  ;;  %2756 = vperm.xlu0 %4185, %v4429_v46   ;;  %4450 = vpow2.f32 %v3589_v49  ;;  %v4443_v48 = vpop.eup %4442 }
 0x2b8   :  { %v2843_v30 = vmul.f32 %v2642_v22, %v5308_v27  ;;  %4186 = vset.pattern.permute.xlu1 %v6309_v39  ;;  %4452 = vrcp.f32 %v2360_v16  ;;  %v4445_v8 = vpop.eup %4444  ;;  %v2362_v31 = vadd.f32 1.0, %v4443_v48  ;;  %v4496_v22 = vld [vmem:[%s6253_s1 + $0x100] sm:$0xff] }
 0x2b9   :  { %3087 = vperm.xlu1 %4186, %v4429_v46   ;;  %4454 = vrcp.f32 %v2363_v9  ;;  %v4502_v9 = vld [vmem:[%s6253_s1 + $0x130] sm:$0xff] }
 0x2ba   :  { %v3227_v21 = vadd.f32 %v3163_v38, %v2843_v30  ;;  %v2637_v13 = vpop.permute.xlu0 %2636  ;;  %4456 = vrcp.f32 %v2362_v31 }
 0x2bb   :  { %4188 = vset.pattern.permute.xlu0 %v6309_v39  ;;  %v2842_v26 = vmul.f32 %v2637_v13, %v5313_v35 }
 0x2bc   :  { %3291 = vst.msk [vmem:[%s6257_s8 + $0xe8] sm:$0xff] %vm884_vm2, %v3227_v21  ;;  %v2992_v27 = vpop.permute.xlu1 %2991  ;;  %3099 = vperm.xlu0 %4188, %v4433_v53  }
 0x2bd   :  { %v3162_v45 = vmul.f32 %v4492_v40, %v2992_v27  ;;  %4187 = vset.pattern.permute.xlu1 %v6308_v4  ;;  %v4447_v54 = vpop.eup %4446 }
 0x2be   :  { %2771 = vperm.xlu1 %4187, %v4433_v53   ;;  %v4449_v51 = vpop.eup %4448 }
 0x2bf   :  { %v3226_v50 = vadd.f32 %v3162_v45, %v2842_v26  ;;  %v3004_v5 = vpop.permute.xlu0 %3003 }
 0x2c0   :  { %4189 = vset.pattern.permute.xlu0 %v6308_v4  ;;  %v3165_v19 = vmul.f32 %v4493_v25, %v3004_v5 }
 0x2c1   :  { %3290 = vst.msk [vmem:[%s6257_s8 + $0xe0] sm:$0xff] %vm884_vm2, %v3226_v50  ;;  %v2652_v35 = vpop.permute.xlu1 %2651  ;;  %2766 = vperm.xlu0 %4189, %v4437_v60  }
 0x2c2   :  { %v2845_v43 = vmul.f32 %v2652_v35, %v5322_v55  ;;  %4190 = vset.pattern.permute.xlu1 %v6309_v39 }
 0x2c3   :  { %3095 = vperm.xlu1 %4190, %v4437_v60  }
 0x2c4   :  { %v3229_v41 = vadd.f32 %v3165_v19, %v2845_v43  ;;  %v2647_v44 = vpop.permute.xlu0 %2646  ;;  %v4451_v46 = vpop.eup %4450 }
 0x2c5   :  { %4192 = vset.pattern.permute.xlu0 %v6309_v39  ;;  %v2844_v55 = vmul.f32 %v2647_v44, %v5329_v62  ;;  %v4453_v30 = vpop.eup %4452  ;;  %v2365_v57 = vadd.f32 1.0, %v4451_v46 }
 0x2c6   :  { %3293 = vst.msk [vmem:[%s6257_s8 + $0xf8] sm:$0xff] %vm884_vm2, %v3229_v41  ;;  %v3000_v2 = vpop.permute.xlu1 %2999  ;;  %3107 = vperm.xlu0 %4192, %v4441_v33   ;;  %v4455_v17 = vpop.eup %4454 }
 0x2c7   :  { %v3164_v59 = vmul.f32 %v4494_v61, %v3000_v2  ;;  %4191 = vset.pattern.permute.xlu1 %v6308_v4  ;;  %v4457_v6 = vpop.eup %4456 }
 0x2c8   :  { %2781 = vperm.xlu1 %4191, %v4441_v33  }
 0x2c9   :  { %v3228_v0 = vadd.f32 %v3164_v59, %v2844_v55  ;;  %v3012_v7 = vpop.permute.xlu0 %3011 }
 0x2ca   :  { %4193 = vset.pattern.permute.xlu0 %v6308_v4  ;;  %v3167_v47 = vmul.f32 %v4495_v52, %v3012_v7  ;;  %v4503_v7 = vld [vmem:[%s6253_s1 + $0x148] sm:$0xff] }
 0x2cb   :  { %3292 = vst.msk [vmem:[%s6257_s8 + $0xf0] sm:$0xff] %vm884_vm2, %v3228_v0  ;;  %v2662_v62 = vpop.permute.xlu1 %2661  ;;  %2776 = vperm.xlu0 %4193, %v4445_v8  }
 0x2cc   :  { %v2847_v29 = vmul.f32 %v2662_v62, %v5339_v10  ;;  %4194 = vset.pattern.permute.xlu1 %v6309_v39  ;;  %v2364_v10 = vadd.f32 1.0, %v4447_v54  ;;  %v4504_v54 = vld [vmem:[%s6253_s1 + $0x140] sm:$0xff] }
 0x2cd   :  { %3103 = vperm.xlu1 %4194, %v4445_v8  }
 0x2ce   :  { %v3231_v20 = vadd.f32 %v3167_v47, %v2847_v29  ;;  %v2657_v37 = vpop.permute.xlu0 %2656  ;;  %4458 = vrcp.f32 %v2364_v10  ;;  %v6310_v29 = vld [vmem:[#allocation2_spill] sm:$0xff]  ;;  %v6311_v10 = vld [vmem:[#allocation4_spill] sm:$0xff] }
 0x2cf   :  { %4196 = vset.pattern.permute.xlu0 %v6309_v39  ;;  %v2846_v12 = vmul.f32 %v2657_v37, %v5332_v24  ;;  %4460 = vrcp.f32 %v2365_v57  ;;  %v4506_v57 = vld [vmem:[%s6253_s1 + $0x150] sm:$0xff] }
 0x2d0   :  { %3295 = vst.msk [vmem:[%s6257_s8 + $0x108] sm:$0xff] %vm884_vm2, %v3231_v20  ;;  %v3008_v18 = vpop.permute.xlu1 %3007  ;;  %3115 = vperm.xlu0 %4196, %v4449_v51  }
 0x2d1   :  { %v3166_v63 = vmul.f32 %v4496_v22, %v3008_v18  ;;  %4195 = vset.pattern.permute.xlu1 %v6308_v4  ;;  %v4505_v18 = vld [vmem:[%s6253_s1 + $0x158] sm:$0xff] }
 0x2d2   :  { %2791 = vperm.xlu1 %4195, %v4449_v51  }
 0x2d3   :  { %v3230_v11 = vadd.f32 %v3166_v63, %v2846_v12  ;;  %v3020_v38 = vpop.permute.xlu0 %3019 }
 0x2d4   :  { %4197 = vset.pattern.permute.xlu0 %v6308_v4  ;;  %v3169_v34 = vmul.f32 %v4497_v15, %v3020_v38  ;;  %v6312_v38 = vld [vmem:[#allocation3_spill] sm:$0xff] }
 0x2d5   :  { %3294 = vst.msk [vmem:[%s6257_s8 + $0x100] sm:$0xff] %vm884_vm2, %v3230_v11  ;;  %v2672_v24 = vpop.permute.xlu1 %2671  ;;  %2786 = vperm.xlu0 %4197, %v4453_v30  }
 0x2d6   :  { %v2849_v21 = vmul.f32 %v2672_v24, %v5353_v23  ;;  %4198 = vset.pattern.permute.xlu1 %v6309_v39  ;;  %v4498_v23 = vld [vmem:[%s6253_s1 + $0x110] sm:$0xff] }
 0x2d7   :  { %3111 = vperm.xlu1 %4198, %v4453_v30  }
 0x2d8   :  { %v3233_v13 = vadd.f32 %v3169_v34, %v2849_v21  ;;  %v2667_v53 = vpop.permute.xlu0 %2666 }
 0x2d9   :  { %4200 = vset.pattern.permute.xlu0 %v6309_v39  ;;  %v2848_v56 = vmul.f32 %v2667_v53, %v5346_v14  ;;  %v4499_v14 = vld [vmem:[%s6253_s1 + $0x128] sm:$0xff] }
 0x2da   :  { %3297 = vst.msk [vmem:[%s6257_s8 + $0x118] sm:$0xff] %vm884_vm2, %v3233_v13  ;;  %v3016_v27 = vpop.permute.xlu1 %3015  ;;  %3123 = vperm.xlu0 %4200, %v4455_v17   ;;  %v4507_v13 = vld [vmem:[%s6253_s1 + $0x168] sm:$0xff] }
 0x2db   :  { %v3168_v26 = vmul.f32 %v4498_v23, %v3016_v27  ;;  %4199 = vset.pattern.permute.xlu1 %v6308_v4  ;;  %v4459_v60 = vpop.eup %4458 }
 0x2dc   :  { %2801 = vperm.xlu1 %4199, %v4455_v17   ;;  %v4461_v19 = vpop.eup %4460  ;;  %v6313_v17 = vld [vmem:[#allocation6_spill] sm:$0xff] }
 0x2dd   :  { %v3232_v40 = vadd.f32 %v3168_v26, %v2848_v56  ;;  %v3028_v45 = vpop.permute.xlu0 %3027 }
 0x2de   :  { %4201 = vset.pattern.permute.xlu0 %v6308_v4  ;;  %v3171_v50 = vmul.f32 %v4499_v14, %v3028_v45 }
 0x2df   :  { %3296 = vst.msk [vmem:[%s6257_s8 + $0x110] sm:$0xff] %vm884_vm2, %v3232_v40  ;;  %v2682_v1 = vpop.permute.xlu1 %2681  ;;  %2796 = vperm.xlu0 %4201, %v4457_v6   ;;  %v6314_v40 = vld [vmem:[#allocation5_spill] sm:$0xff] }
 0x2e0   :  { %v2851_v5 = vmul.f32 %v2682_v1, %v5367_v42  ;;  %4202 = vset.pattern.permute.xlu1 %v6309_v39  ;;  %v4500_v42 = vld [vmem:[%s6253_s1 + $0x120] sm:$0xff] }
 0x2e1   :  { %3119 = vperm.xlu1 %4202, %v4457_v6   ;;  %v4508_v6 = vld [vmem:[%s6253_s1 + $0x160] sm:$0xff] }
 0x2e2   :  { %v3235_v49 = vadd.f32 %v3171_v50, %v2851_v5  ;;  %v2677_v35 = vpop.permute.xlu0 %2676 }
 0x2e3   :  { %2806 = vperm.xlu0 %4201, %v4459_v60   ;;  %v2850_v43 = vmul.f32 %v2677_v35, %v5360_v28  ;;  %v4501_v28 = vld [vmem:[%s6253_s1 + $0x138] sm:$0xff]  ;;  %v6315_v35 = vld [vmem:[#allocation8_spill] sm:$0xff] }
 0x2e4   :  { %3299 = vst.msk [vmem:[%s6257_s8 + $0x128] sm:$0xff] %vm884_vm2, %v3235_v49  ;;  %v3024_v25 = vpop.permute.xlu1 %3023 }
 0x2e5   :  { %v3170_v16 = vmul.f32 %v4500_v42, %v3024_v25  ;;  %4203 = vset.pattern.permute.xlu1 %v6308_v4 }
 0x2e6   :  { %2811 = vperm.xlu1 %4203, %v4461_v19  }
 0x2e7   :  { %v3234_v3 = vadd.f32 %v3170_v16, %v2850_v43  ;;  %4205 = vset.pattern.permute.xlu0 %v6309_v39  ;;  %v3036_v41 = vpop.permute.xlu0 %3035  ;;  %v6316_v16 = vld [vmem:[#allocation7_spill] sm:$0xff] }
 0x2e8   :  { %3131 = vperm.xlu0 %4205, %v4461_v19   ;;  %v3173_v33 = vmul.f32 %v4501_v28, %v3036_v41  ;;  %v4510_v41 = vld [vmem:[%s6253_s1 + $0x170] sm:$0xff] }
 0x2e9   :  { %3298 = vst.msk [vmem:[%s6257_s8 + $0x120] sm:$0xff] %vm884_vm2, %v3234_v3  ;;  %v2692_v44 = vpop.permute.xlu1 %2691 }
 0x2ea   :  { %v2853_v2 = vmul.f32 %v2692_v44, %v5381_v58  ;;  %4204 = vset.pattern.permute.xlu1 %v6309_v39 }
 0x2eb   :  { %3127 = vperm.xlu1 %4204, %v4459_v60   ;;  %v4509_v60 = vld [vmem:[%s6253_s1 + $0x178] sm:$0xff] }
 0x2ec   :  { %v3237_v4 = vadd.f32 %v3173_v33, %v2853_v2  ;;  %v2687_v55 = vpop.permute.xlu0 %2686 }
 0x2ed   :  { %v2852_v59 = vmul.f32 %v2687_v55, %v5374_v36 }
 0x2ee   :  { %3301 = vst.msk [vmem:[%s6257_s8 + $0x138] sm:$0xff] %vm884_vm2, %v3237_v4  ;;  %v3032_v61 = vpop.permute.xlu1 %3031  ;;  %v4511_v4 = vld [vmem:[%s6253_s1 + $0x188] sm:$0xff] }
 0x2ef   :  { %v3172_v48 = vmul.f32 %v4502_v9, %v3032_v61  ;;  %v6317_v61 = vld [vmem:[#allocation10_spill] sm:$0xff] }
 0x2f1   :  { %v3236_v0 = vadd.f32 %v3172_v48, %v2852_v59  ;;  %v3044_v58 = vpop.permute.xlu0 %3043 }
 0x2f2   :  { %v3175_v8 = vmul.f32 %v4503_v7, %v3044_v58  ;;  %v6318_v58 = vld [vmem:[#allocation9_spill] sm:$0xff]  ;;  %v4512_v7 = vld [vmem:[%s6253_s1 + $0x180] sm:$0xff] }
 0x2f3   :  { %3300 = vst.msk [vmem:[%s6257_s8 + $0x130] sm:$0xff] %vm884_vm2, %v3236_v0  ;;  %v2702_v39 = vpop.permute.xlu1 %2701 }
 0x2f4   :  { %v2855_v36 = vmul.f32 %v2702_v39, %v5395_v32 }
 0x2f6   :  { %v3239_v62 = vadd.f32 %v3175_v8, %v2855_v36  ;;  %v2697_v52 = vpop.permute.xlu0 %2696 }
 0x2f7   :  { %v2854_v31 = vmul.f32 %v2697_v52, %v6310_v29 }
 0x2f8   :  { %3303 = vst.msk [vmem:[%s6257_s8 + $0x148] sm:$0xff] %vm884_vm2, %v3239_v62  ;;  %v3040_v47 = vpop.permute.xlu1 %3039 }
 0x2f9   :  { %v3174_v20 = vmul.f32 %v4504_v54, %v3040_v47  ;;  %v4513_v47 = vld [vmem:[%s6253_s1 + $0x198] sm:$0xff] }
 0x2fb   :  { %v3238_v37 = vadd.f32 %v3174_v20, %v2854_v31  ;;  %v3052_v51 = vpop.permute.xlu0 %3051  ;;  %v6319_v31 = vld [vmem:[#allocation12_spill] sm:$0xff] }
 0x2fc   :  { %v3177_v46 = vmul.f32 %v4505_v18, %v3052_v51 }
 0x2fd   :  { %3302 = vst.msk [vmem:[%s6257_s8 + $0x140] sm:$0xff] %vm884_vm2, %v3238_v37  ;;  %v2712_v32 = vpop.permute.xlu1 %2711 }
 0x2fe   :  { %v2857_v12 = vmul.f32 %v2712_v32, %v6311_v10  ;;  %v6320_v32 = vld [vmem:[#allocation11_spill] sm:$0xff] }
 0x300   :  { %v3241_v22 = vadd.f32 %v3177_v46, %v2857_v12  ;;  %v2707_v63 = vpop.permute.xlu0 %2706  ;;  %v4514_v46 = vld [vmem:[%s6253_s1 + $0x190] sm:$0xff] }
 0x301   :  { %v2856_v30 = vmul.f32 %v2707_v63, %v6312_v38 }
 0x302   :  { %3305 = vst.msk [vmem:[%s6257_s8 + $0x158] sm:$0xff] %vm884_vm2, %v3241_v22  ;;  %v3048_v11 = vpop.permute.xlu1 %3047 }
 0x303   :  { %v3176_v24 = vmul.f32 %v4506_v57, %v3048_v11  ;;  %v4515_v11 = vld [vmem:[%s6253_s1 + $0x1a8] sm:$0xff] }
 0x305   :  { %v3240_v15 = vadd.f32 %v3176_v24, %v2856_v30  ;;  %v3060_v34 = vpop.permute.xlu0 %3059  ;;  %v6321_v30 = vld [vmem:[#allocation14_spill] sm:$0xff] }
 0x306   :  { %v3179_v53 = vmul.f32 %v4507_v13, %v3060_v34 }
 0x307   :  { %3304 = vst.msk [vmem:[%s6257_s8 + $0x150] sm:$0xff] %vm884_vm2, %v3240_v15  ;;  %v2722_v21 = vpop.permute.xlu1 %2721 }
 0x308   :  { %v2859_v27 = vmul.f32 %v2722_v21, %v6313_v17  ;;  %v6322_v21 = vld [vmem:[#allocation13_spill] sm:$0xff] }
 0x30a   :  { %v3243_v56 = vadd.f32 %v3179_v53, %v2859_v27  ;;  %v2717_v23 = vpop.permute.xlu0 %2716  ;;  %v4516_v53 = vld [vmem:[%s6253_s1 + $0x1a0] sm:$0xff] }
 0x30b   :  { %v2858_v45 = vmul.f32 %v2717_v23, %v6314_v40 }
 0x30c   :  { %3307 = vst.msk [vmem:[%s6257_s8 + $0x168] sm:$0xff] %vm884_vm2, %v3243_v56  ;;  %v3056_v26 = vpop.permute.xlu1 %3055 }
 0x30d   :  { %v3178_v1 = vmul.f32 %v4508_v6, %v3056_v26  ;;  %v4517_v26 = vld [vmem:[%s6253_s1 + $0x1b8] sm:$0xff] }
 0x30f   :  { %v3242_v14 = vadd.f32 %v3178_v1, %v2858_v45  ;;  %v3068_v50 = vpop.permute.xlu0 %3067  ;;  %v6323_v45 = vld [vmem:[#allocation16_spill] sm:$0xff] }
 0x310   :  { %v3181_v49 = vmul.f32 %v4509_v60, %v3068_v50 }
 0x311   :  { %3306 = vst.msk [vmem:[%s6257_s8 + $0x160] sm:$0xff] %vm884_vm2, %v3242_v14  ;;  %v2732_v5 = vpop.permute.xlu1 %2731 }
 0x312   :  { %v2861_v25 = vmul.f32 %v2732_v5, %v6315_v35  ;;  %v6324_v5 = vld [vmem:[#allocation15_spill] sm:$0xff] }
 0x314   :  { %v3245_v19 = vadd.f32 %v3181_v49, %v2861_v25  ;;  %v2727_v43 = vpop.permute.xlu0 %2726  ;;  %v4518_v49 = vld [vmem:[%s6253_s1 + $0x1b0] sm:$0xff] }
 0x315   :  { %v2860_v3 = vmul.f32 %v2727_v43, %v6316_v16 }
 0x316   :  { %3309 = vst.msk [vmem:[%s6257_s8 + $0x178] sm:$0xff] %vm884_vm2, %v3245_v19  ;;  %v3064_v42 = vpop.permute.xlu1 %3063 }
 0x317   :  { %v3180_v44 = vmul.f32 %v4510_v41, %v3064_v42  ;;  %v4519_v42 = vld [vmem:[%s6253_s1 + $0x1c8] sm:$0xff] }
 0x319   :  { %v3244_v28 = vadd.f32 %v3180_v44, %v2860_v3  ;;  %v3076_v33 = vpop.permute.xlu0 %3075  ;;  %v6325_v3 = vld [vmem:[#allocation18_spill] sm:$0xff] }
 0x31a   :  { %v3183_v55 = vmul.f32 %v4511_v4, %v3076_v33 }
 0x31b   :  { %3308 = vst.msk [vmem:[%s6257_s8 + $0x170] sm:$0xff] %vm884_vm2, %v3244_v28  ;;  %v2742_v2 = vpop.permute.xlu1 %2741 }
 0x31c   :  { %v2863_v59 = vmul.f32 %v2742_v2, %v6317_v61  ;;  %v6326_v2 = vld [vmem:[#allocation17_spill] sm:$0xff] }
 0x31e   :  { %v3247_v9 = vadd.f32 %v3183_v55, %v2863_v59  ;;  %v2737_v48 = vpop.permute.xlu0 %2736  ;;  %v4520_v55 = vld [vmem:[%s6253_s1 + $0x1c0] sm:$0xff] }
 0x31f   :  { %v2862_v39 = vmul.f32 %v2737_v48, %v6318_v58 }
 0x320   :  { %3311 = vst.msk [vmem:[%s6257_s8 + $0x188] sm:$0xff] %vm884_vm2, %v3247_v9  ;;  %v3072_v0 = vpop.permute.xlu1 %3071 }
 0x321   :  { %v3182_v8 = vmul.f32 %v4512_v7, %v3072_v0  ;;  %v4521_v0 = vld [vmem:[%s6253_s1 + $0x1d8] sm:$0xff] }
 0x323   :  { %v3246_v36 = vadd.f32 %v3182_v8, %v2862_v39  ;;  %v3084_v62 = vpop.permute.xlu0 %3083  ;;  %v6327_v39 = vld [vmem:[#allocation20_spill] sm:$0xff] }
 0x324   :  { %v3185_v29 = vmul.f32 %v4513_v47, %v3084_v62 }
 0x325   :  { %3310 = vst.msk [vmem:[%s6257_s8 + $0x180] sm:$0xff] %vm884_vm2, %v3246_v36  ;;  %v2752_v52 = vpop.permute.xlu1 %2751 }
 0x326   :  { %v2865_v54 = vmul.f32 %v2752_v52, %v6319_v31  ;;  %v6328_v52 = vld [vmem:[#allocation19_spill] sm:$0xff] }
 0x328   :  { %v3249_v20 = vadd.f32 %v3185_v29, %v2865_v54  ;;  %v2747_v37 = vpop.permute.xlu0 %2746  ;;  %v4522_v29 = vld [vmem:[%s6253_s1 + $0x1d0] sm:$0xff] }
 0x329   :  { %v2864_v18 = vmul.f32 %v2747_v37, %v6320_v32 }
 0x32a   :  { %3313 = vst.msk [vmem:[%s6257_s8 + $0x198] sm:$0xff] %vm884_vm2, %v3249_v20  ;;  %v3080_v51 = vpop.permute.xlu1 %3079 }
 0x32b   :  { %v3184_v10 = vmul.f32 %v4514_v46, %v3080_v51  ;;  %v4523_v51 = vld [vmem:[%s6253_s1 + $0x1e8] sm:$0xff] }
 0x32d   :  { %v3248_v12 = vadd.f32 %v3184_v10, %v2864_v18  ;;  %v3092_v22 = vpop.permute.xlu0 %3091  ;;  %v6329_v18 = vld [vmem:[#allocation22_spill] sm:$0xff] }
 0x32e   :  { %v3187_v38 = vmul.f32 %v4515_v11, %v3092_v22 }
 0x32f   :  { %3312 = vst.msk [vmem:[%s6257_s8 + $0x190] sm:$0xff] %vm884_vm2, %v3248_v12  ;;  %v2762_v63 = vpop.permute.xlu1 %2761 }
 0x330   :  { %v2867_v57 = vmul.f32 %v2762_v63, %v6321_v30  ;;  %v6330_v63 = vld [vmem:[#allocation21_spill] sm:$0xff] }
 0x332   :  { %v3251_v24 = vadd.f32 %v3187_v38, %v2867_v57  ;;  %v2757_v15 = vpop.permute.xlu0 %2756  ;;  %v4524_v38 = vld [vmem:[%s6253_s1 + $0x1e0] sm:$0xff] }
 0x333   :  { %v2866_v13 = vmul.f32 %v2757_v15, %v6322_v21  ;;  %v6331_v21 = vld [vmem:[#allocation24_spill] sm:$0xff] }
 0x334   :  { %3315 = vst.msk [vmem:[%s6257_s8 + $0x1a8] sm:$0xff] %vm884_vm2, %v3251_v24  ;;  %v3088_v34 = vpop.permute.xlu1 %3087 }
 0x335   :  { %v3186_v17 = vmul.f32 %v4516_v53, %v3088_v34  ;;  %v4525_v53 = vld [vmem:[%s6253_s1 + $0x1f8] sm:$0xff] }
 0x337   :  { %v3250_v27 = vadd.f32 %v3186_v17, %v2866_v13  ;;  %v3100_v56 = vpop.permute.xlu0 %3099 }
 0x338   :  { %v3189_v40 = vmul.f32 %v4517_v26, %v3100_v56 }
 0x339   :  { %3314 = vst.msk [vmem:[%s6257_s8 + $0x1a0] sm:$0xff] %vm884_vm2, %v3250_v27  ;;  %v2772_v23 = vpop.permute.xlu1 %2771 }
 0x33a   :  { %v2869_v6 = vmul.f32 %v2772_v23, %v6323_v45  ;;  %v6332_v23 = vld [vmem:[#allocation23_spill] sm:$0xff] }
 0x33c   :  { %v3253_v1 = vadd.f32 %v3189_v40, %v2869_v6  ;;  %v2767_v14 = vpop.permute.xlu0 %2766  ;;  %v4526_v40 = vld [vmem:[%s6253_s1 + $0x1f0] sm:$0xff] }
 0x33d   :  { %v2868_v60 = vmul.f32 %v2767_v14, %v6324_v5 }
 0x33e   :  { %3317 = vst.msk [vmem:[%s6257_s8 + $0x1b8] sm:$0xff] %vm884_vm2, %v3253_v1  ;;  %v3096_v50 = vpop.permute.xlu1 %3095 }
 0x33f   :  { %v3188_v35 = vmul.f32 %v4518_v49, %v3096_v50 }
 0x341   :  { %v3252_v25 = vadd.f32 %v3188_v35, %v2868_v60  ;;  %v3108_v19 = vpop.permute.xlu0 %3107 }
 0x342   :  { %v3191_v16 = vmul.f32 %v4519_v42, %v3108_v19 }
 0x343   :  { %3316 = vst.msk [vmem:[%s6257_s8 + $0x1b0] sm:$0xff] %vm884_vm2, %v3252_v25  ;;  %v2782_v43 = vpop.permute.xlu1 %2781 }
 0x344   :  { %v2871_v41 = vmul.f32 %v2782_v43, %v6325_v3 }
 0x346   :  { %v3255_v44 = vadd.f32 %v3191_v16, %v2871_v41  ;;  %v2777_v28 = vpop.permute.xlu0 %2776 }
 0x347   :  { %v2870_v4 = vmul.f32 %v2777_v28, %v6326_v2 }
 0x348   :  { %3319 = vst.msk [vmem:[%s6257_s8 + $0x1c8] sm:$0xff] %vm884_vm2, %v3255_v44  ;;  %v3104_v33 = vpop.permute.xlu1 %3103 }
 0x349   :  { %v3190_v61 = vmul.f32 %v4520_v55, %v3104_v33 }
 0x34b   :  { %v3254_v59 = vadd.f32 %v3190_v61, %v2870_v4  ;;  %v3116_v9 = vpop.permute.xlu0 %3115 }
 0x34c   :  { %v3193_v58 = vmul.f32 %v4521_v0, %v3116_v9 }
 0x34d   :  { %3318 = vst.msk [vmem:[%s6257_s8 + $0x1c0] sm:$0xff] %vm884_vm2, %v3254_v59  ;;  %v2792_v48 = vpop.permute.xlu1 %2791 }
 0x34e   :  { %v2873_v7 = vmul.f32 %v2792_v48, %v6327_v39 }
 0x350   :  { %v3257_v8 = vadd.f32 %v3193_v58, %v2873_v7  ;;  %v2787_v36 = vpop.permute.xlu0 %2786 }
 0x351   :  { %v2872_v47 = vmul.f32 %v2787_v36, %v6328_v52 }
 0x352   :  { %3321 = vst.msk [vmem:[%s6257_s8 + $0x1d8] sm:$0xff] %vm884_vm2, %v3257_v8  ;;  %v3112_v62 = vpop.permute.xlu1 %3111 }
 0x353   :  { %v3192_v31 = vmul.f32 %v4522_v29, %v3112_v62 }
 0x355   :  { %v3256_v54 = vadd.f32 %v3192_v31, %v2872_v47  ;;  %v3124_v20 = vpop.permute.xlu0 %3123 }
 0x356   :  { %v3195_v32 = vmul.f32 %v4523_v51, %v3124_v20 }
 0x357   :  { %3320 = vst.msk [vmem:[%s6257_s8 + $0x1d0] sm:$0xff] %vm884_vm2, %v3256_v54  ;;  %v2802_v37 = vpop.permute.xlu1 %2801 }
 0x358   :  { %v2875_v46 = vmul.f32 %v2802_v37, %v6329_v18 }
 0x35a   :  { %v3259_v10 = vadd.f32 %v3195_v32, %v2875_v46  ;;  %v2797_v12 = vpop.permute.xlu0 %2796 }
 0x35b   :  { %v2874_v11 = vmul.f32 %v2797_v12, %v6330_v63 }
 0x35c   :  { %3323 = vst.msk [vmem:[%s6257_s8 + $0x1e8] sm:$0xff] %vm884_vm2, %v3259_v10  ;;  %v3120_v22 = vpop.permute.xlu1 %3119 }
 0x35d   :  { %v3194_v30 = vmul.f32 %v4524_v38, %v3120_v22 }
 0x35e   :  { %v2807_v57 = vpop.permute.xlu0 %2806 }
 0x35f   :  { %v3258_v24 = vadd.f32 %v3194_v30, %v2874_v11  ;;  %v2876_v26 = vmul.f32 %v2807_v57, %v6332_v23 }
 0x361   :  { %3322 = vst.msk [vmem:[%s6257_s8 + $0x1e0] sm:$0xff] %vm884_vm2, %v3258_v24  ;;  %v2812_v15 = vpop.permute.xlu1 %2811 }
 0x362   :  { %v2877_v13 = vmul.f32 %v2812_v15, %v6331_v21 }
 0x363   :  { %v3132_v34 = vpop.permute.xlu0 %3131 }
 0x364   :  { %v3197_v17 = vmul.f32 %v4525_v53, %v3132_v34 }
 0x366   :  { %v3261_v27 = vadd.f32 %v3197_v17, %v2877_v13  ;;  %v3128_v56 = vpop.permute.xlu1 %3127 }
 0x367   :  { %v3196_v45 = vmul.f32 %v4526_v40, %v3128_v56 }
 0x368   :  { %3325 = vst.msk [vmem:[%s6257_s8 + $0x1f8] sm:$0xff] %vm884_vm2, %v3261_v27 }
 0x369   :  { %v3260_v6 = vadd.f32 %v3196_v45, %v2876_v26 }
 0x36b   :  { %3324 = vst.msk [vmem:[%s6257_s8 + $0x1f0] sm:$0xff] %vm884_vm2, %v3260_v6 }

</bundles_post_ra>
